<compile_context>
chip_gen: v7x
topology: tpu7x:2x2x1
jax: 0.10.0
libtpu: 0.0.40
codegen_flags: <defaults>
</compile_context>

<pallas_src>
import jax
import jax.numpy as jnp
from jax.experimental import pallas as pl
from jax.experimental.pallas import tpu as pltpu


# ----------------------------- Stage 1: attention + LSTM cell (runs once) -----------------------------
def attn_lstm_kernel(emb_ref, hid_ref, enc_ref, negmask_ref,
                     wa_h_ref, wa_e_ref, ba_ref, v_ref,
                     wih_e_ref, wih_w_ref, whh_ref, bg_ref,
                     z_ref, hnew_ref, attn_ref):
    f32 = jnp.float32
    bf16 = jnp.bfloat16

    emb = emb_ref[...]                      # (B, E)      f32
    hid = hid_ref[...]                      # (B, H)      f32
    enc2d = enc_ref[...]                    # (B*S, 2EH)  bf16
    neg_mask = negmask_ref[...]             # (B, S)      f32 (0 = valid, -1e10 = masked)

    B, H = hid.shape
    E = emb.shape[1]
    S = neg_mask.shape[1]
    EH2 = enc2d.shape[1]

    emb_bf = emb.astype(bf16)
    hid_bf = hid.astype(bf16)

    # ---- Attention: softmax( v . tanh([hid; enc] @ Wa + ba) + mask ) ----
    hid_part = jnp.dot(hid_bf, wa_h_ref[...], preferred_element_type=f32)           # (B, H)
    enc_part = jnp.dot(enc2d, wa_e_ref[...], preferred_element_type=f32)            # (B*S, H)
    energy = jnp.tanh(enc_part.reshape(B, S, H)            # one-time tile-aligned view
                      + hid_part[:, None, :]
                      + ba_ref[...][None, :, :])                                     # (B, S, H)
    scores = jnp.sum(energy * v_ref[...][None, :, :], axis=-1) + neg_mask            # (B, S)

    m = jnp.max(scores, axis=1, keepdims=True)
    e = jnp.exp(scores - m)
    a = e / jnp.sum(e, axis=1, keepdims=True)                                        # (B, S)
    attn_ref[...] = a

    # ---- Weighted context: bmm(a, enc), f32 accumulation ----
    enc3d = enc2d.astype(f32).reshape(B, S, EH2)
    weighted = jnp.sum(a[:, :, None] * enc3d, axis=1)                                # (B, 2EH)
    w_bf = weighted.astype(bf16)

    # ---- Single-step LSTM cell (c_0 = 0 -> forget gate dead) ----
    gates = (jnp.dot(emb_bf, wih_e_ref[...], preferred_element_type=f32)
             + jnp.dot(w_bf, wih_w_ref[...], preferred_element_type=f32)
             + jnp.dot(hid_bf, whh_ref[...], preferred_element_type=f32)
             + bg_ref[...])                                                          # (B, 4H)
    i_g = jax.nn.sigmoid(gates[:, 0:H])
    g_g = jnp.tanh(gates[:, 2 * H:3 * H])
    o_g = jax.nn.sigmoid(gates[:, 3 * H:4 * H])
    h_new = o_g * jnp.tanh(i_g * g_g)                                                # (B, H)
    hnew_ref[...] = h_new

    # ---- Lane-concatenated projection input z = [h_new | weighted | emb] (bf16) ----
    z_ref[:, 0:H] = h_new.astype(bf16)
    z_ref[:, H:H + EH2] = w_bf
    z_ref[:, H + EH2:H + EH2 + E] = emb_bf


# ----------------------------- Stage 2: vocab-tiled output projection -----------------------------
def vocab_projection_kernel(z_ref, wo_ref, bo_ref, pred_ref):
    pred_ref[...] = (jnp.dot(z_ref[...], wo_ref[...], preferred_element_type=jnp.float32)
                     + bo_ref[...])


# ----------------------------- Tiling / packing helpers -----------------------------
_TV_CANDIDATES = (2048, 1024, 512, 256, 128)
_TILE_BUDGET_BYTES = 20 * 1024 * 1024     # headroom under the 32 MiB scoped-VMEM limit (v7x-safe)


def _choose_vocab_tile(K, V, *, must_divide=False):
    """Largest vocab tile whose double-buffered bf16 weight tile (+ small bias/pred/z tiles)
    fits the VMEM budget. With must_divide=True only tiles that divide V are considered
    (V is then expected to already be a multiple of 128)."""
    v_pad128 = 128 * pl.cdiv(V, 128)
    for cand in _TV_CANDIDATES:
        if cand > v_pad128:
            continue
        if must_divide and v_pad128 % cand != 0:
            continue
        need = 2 * (K * cand * 2) + 4 * (8 * cand * 4)   # 2x bf16 weight tile + bias/pred slack
        if need <= _TILE_BUDGET_BYTES:
            return cand
    return 128


def pack_params(p):
    """Pre-slice / pre-cast weights once.  W_out stays stacked (rows ordered [H | 2EH | E] to
    match z) and is zero-padded along vocab to a multiple of the chosen tile size."""
    bf16 = jnp.bfloat16
    E = p['embedding'].shape[1]
    K, V = p['w_out'].shape
    tv = _choose_vocab_tile(K, V)
    v_pad = tv * pl.cdiv(V, tv)

    w_out = p['w_out'].astype(bf16)
    b_out = p['b_out']
    if v_pad != V:
        w_out = jnp.pad(w_out, ((0, 0), (0, v_pad - V)))
        b_out = jnp.pad(b_out, ((0, 0), (0, v_pad - V)))

    return {
        'embedding': p['embedding'],
        'wa_h': p['wa_h'].astype(bf16),
        'wa_e': p['wa_e'].astype(bf16),
        'ba': p['ba'],
        'v_row': p['v'].T,                                   # (1, H), lane-friendly
        'w_ih_e': p['w_ih'][:E].astype(bf16),
        'w_ih_w': p['w_ih'][E:].astype(bf16),
        'w_hh': p['w_hh'].astype(bf16),
        'b_gates': p['b_ih'] + p['b_hh'],
        'w_out': w_out,                                      # (K, V_pad) bf16, stacked
        'b_out': b_out,                                      # (1, V_pad) f32
    }


# ----------------------------- Forward wrapper -----------------------------
@jax.jit
def lstm_decoder_forward(kp, input_ids, hidden, encoder_outputs, mask):
    bf16 = jnp.bfloat16
    # Embedding gather + (eval-mode) dropout stay in plain JAX glue.
    embedded = jnp.take(kp['embedding'], input_ids, axis=0)            # (B, E) f32
    B, S, EH2 = encoder_outputs.shape
    H = hidden.shape[1]
    V = kp['embedding'].shape[0]                                        # un-padded vocab
    K, V_pad = kp['w_out'].shape                                        # K = H + 2EH + E

    enc2d = encoder_outputs.reshape(B * S, EH2).astype(bf16)           # half DMA / VMEM for enc
    neg_mask = (mask - 1.0) * jnp.float32(1e10)                        # additive mask

    def full_spec(x):                                                  # resident full-array block
        nd = x.ndim
        return pl.BlockSpec(x.shape, lambda i, nd=nd: (0,) * nd)

    stage1_inputs = (embedded, hidden, enc2d, neg_mask,
                     kp['wa_h'], kp['wa_e'], kp['ba'], kp['v_row'],
                     kp['w_ih_e'], kp['w_ih_w'], kp['w_hh'], kp['b_gates'])

    z, h_new, attn = pl.pallas_call(
        attn_lstm_kernel,
        out_shape=(jax.ShapeDtypeStruct((B, K), bf16),
                   jax.ShapeDtypeStruct((B, H), jnp.float32),
                   jax.ShapeDtypeStruct((B, S), jnp.float32)),
        grid=(1,),
        in_specs=[full_spec(x) for x in stage1_inputs],
        out_specs=(pl.BlockSpec((B, K), lambda i: (0, 0)),
                   pl.BlockSpec((B, H), lambda i: (0, 0)),
                   pl.BlockSpec((B, S), lambda i: (0, 0))),
        compiler_params=pltpu.CompilerParams(dimension_semantics=("arbitrary",)),
    )(*stage1_inputs)

    # Vocab-tiled projection: W_out streams tile-by-tile, z stays VMEM-resident.
    TV = _choose_vocab_tile(K, V_pad, must_divide=True)
    NV = V_pad // TV

    wo_kwargs = {}
    if NV >= 3:
        # Deeper pipelining on the dominant weight stream (body is a single dot).
        wo_kwargs['pipeline_mode'] = pl.Buffered(3)
    wo_spec = pl.BlockSpec((K, TV), lambda j: (0, j), **wo_kwargs)

    pred_pad = pl.pallas_call(
        vocab_projection_kernel,
        out_shape=jax.ShapeDtypeStruct((B, V_pad), jnp.float32),
        grid=(NV,),
        in_specs=[pl.BlockSpec((B, K), lambda j: (0, 0)),
                  wo_spec,
                  pl.BlockSpec((1, TV), lambda j: (0, j))],
        out_specs=pl.BlockSpec((B, TV), lambda j: (0, j)),
        compiler_params=pltpu.CompilerParams(
            dimension_semantics=("parallel",),
            vmem_limit_bytes=32 * 1024 * 1024),
    )(z, kp['w_out'], kp['b_out'])

    return pred_pad[:, :V], h_new, attn


# ----------------------------- Pure-JAX f32 reference -----------------------------
def reference_forward(params, input_ids, hidden, encoder_outputs, mask):
    hp = jax.lax.Precision.HIGHEST
    emb = params['embedding'][input_ids]
    H = hidden.shape[1]
    hid_part = jnp.dot(hidden, params['wa_h'], precision=hp)
    enc_part = jnp.einsum('bse,eh->bsh', encoder_outputs, params['wa_e'], precision=hp)
    energy = jnp.tanh(enc_part + hid_part[:, None, :] + params['ba'][None, :, :])
    scores = jnp.einsum('bsh,h->bs', energy, params['v'][:, 0], precision=hp)
    scores = jnp.where(mask == 0.0, -1e10, scores)
    a = jax.nn.softmax(scores, axis=1)
    weighted = jnp.einsum('bs,bse->be', a, encoder_outputs, precision=hp)
    x = jnp.concatenate([emb, weighted], axis=1)
    gates = (jnp.dot(x, params['w_ih'], precision=hp) + params['b_ih']
             + jnp.dot(hidden, params['w_hh'], precision=hp) + params['b_hh'])
    i = jax.nn.sigmoid(gates[:, :H])
    g = jnp.tanh(gates[:, 2 * H:3 * H])
    o = jax.nn.sigmoid(gates[:, 3 * H:4 * H])
    h_new = o * jnp.tanh(i * g)
    z = jnp.concatenate([h_new, weighted, emb], axis=1)
    pred = jnp.dot(z, params['w_out'], precision=hp) + params['b_out']
    return pred, h_new, a


if __name__ == "__main__":
    # Small, module-consistent shapes (V deliberately not a multiple of 128 to exercise padding).
    B, S = 8, 16        # batch, src_len
    E = 32              # emb_dim
    EH = 16             # enc_hid_dim  (encoder features = 2*EH = 32)
    H = 32              # dec_hid_dim
    V = 200             # output_dim (vocab)

    key = jax.random.PRNGKey(0)
    ks = jax.random.split(key, 16)
    sc = 0.1
    params = {
        'embedding': jax.random.normal(ks[0], (V, E), jnp.float32) * sc,
        'wa_h':      jax.random.normal(ks[1], (H, H), jnp.float32) * sc,        # attn W (hidden part)
        'wa_e':      jax.random.normal(ks[2], (2 * EH, H), jnp.float32) * sc,   # attn W (encoder part)
        'ba':        jax.random.normal(ks[3], (1, H), jnp.float32) * sc,
        'v':         jax.random.normal(ks[4], (H, 1), jnp.float32) * sc,
        'w_ih':      jax.random.normal(ks[5], (E + 2 * EH, 4 * H), jnp.float32) * sc,
        'w_hh':      jax.random.normal(ks[6], (H, 4 * H), jnp.float32) * sc,
        'b_ih':      jax.random.normal(ks[7], (1, 4 * H), jnp.float32) * sc,
        'b_hh':      jax.random.normal(ks[8], (1, 4 * H), jnp.float32) * sc,
        'w_out':     jax.random.normal(ks[9], (H + 2 * EH + E, V), jnp.float32) * sc,
        'b_out':     jax.random.normal(ks[10], (1, V), jnp.float32) * sc,
    }

    input_ids = jax.random.randint(ks[11], (B,), 0, V)
    hidden = jax.random.normal(ks[12], (B, H), jnp.float32) * sc
    encoder_outputs = jax.random.normal(ks[13], (B, S, 2 * EH), jnp.float32) * sc
    lengths = jax.random.randint(ks[14], (B,), S // 2, S + 1)
    mask = (jnp.arange(S)[None, :] < lengths[:, None]).astype(jnp.float32)

    kparams = pack_params(params)

    pred, h_new, a = jax.block_until_ready(
        lstm_decoder_forward(kparams, input_ids, hidden, encoder_outputs, mask))

    pred_r, h_r, a_r = reference_forward(params, input_ids, hidden, encoder_outputs, mask)

    assert pred.shape == (B, V) and h_new.shape == (B, H) and a.shape == (B, S)
    assert jnp.allclose(pred, pred_r, atol=1e-2, rtol=1e-2)
    assert jnp.allclose(h_new, h_r, atol=1e-2, rtol=1e-2)
    assert jnp.allclose(a, a_r, atol=1e-2, rtol=1e-2)
    # attention rows sum to 1
    assert jnp.allclose(jnp.sum(a, axis=1), jnp.ones((B,)), atol=1e-4)

    print("KERNEL_OK")
</pallas_src>

<mosaic_0001>
module attributes {stable_mosaic.version = 11 : i64} {
  func.func @vocab_projection_kernel(%arg0: i32, %arg1: memref<8x96xbf16, #tpu.memory_space<vmem>>, %arg2: memref<96x256xbf16, #tpu.memory_space<vmem>>, %arg3: memref<1x256xf32, #tpu.memory_space<vmem>>, %arg4: memref<8x256xf32, #tpu.memory_space<vmem>>) attributes {dimension_semantics = [#tpu.dimension_semantics<parallel>], iteration_bounds = array<i64: 1>, scalar_prefetch = 0 : i64, scratch_operands = 0 : i64, tpu.core_type = #tpu.core_type<tc>, window_params = [{pipeline_mode = #tpu.pipeline_mode<synchronous>, transform_indices = @transform_0, window_bounds = array<i64: 8, 96>}, {transform_indices = @transform_1, window_bounds = array<i64: 96, 256>}, {transform_indices = @transform_2, window_bounds = array<i64: 1, 256>}, {transform_indices = @transform_3, window_bounds = array<i64: 8, 256>}]} {
    %c0 = arith.constant 0 : index
    %c0_0 = arith.constant 0 : index
    %0 = vector.load %arg1[%c0, %c0_0] : memref<8x96xbf16, #tpu.memory_space<vmem>>, vector<8x96xbf16>
    %c0_1 = arith.constant 0 : index
    %c0_2 = arith.constant 0 : index
    %1 = vector.load %arg2[%c0_1, %c0_2] : memref<96x256xbf16, #tpu.memory_space<vmem>>, vector<96x256xbf16>
    %cst = arith.constant dense<0.000000e+00> : vector<8x256xf32>
    %2 = tpu.matmul %0, %1, %cst {dimension_numbers = #tpu.dot_dimension_numbers<[1], [0], [0], [1], [0, 0, 1, 1], [], []>} : vector<8x96xbf16>, vector<96x256xbf16>, vector<8x256xf32> -> vector<8x256xf32>
    %c0_3 = arith.constant 0 : index
    %c0_4 = arith.constant 0 : index
    %3 = vector.load %arg3[%c0_3, %c0_4] : memref<1x256xf32, #tpu.memory_space<vmem>>, vector<1x256xf32>
    %4 = vector.broadcast %3 : vector<1x256xf32> to vector<8x256xf32>
    %5 = arith.addf %2, %4 : vector<8x256xf32>
    %c0_5 = arith.constant 0 : index
    %c0_6 = arith.constant 0 : index
    %6 = vector.load %arg4[%c0_5, %c0_6] : memref<8x256xf32, #tpu.memory_space<vmem>>, vector<8x256xf32>
    tpu.vector_store %arg4[%c0_5, %c0_6], %5 {strides = array<i32>} : memref<8x256xf32, #tpu.memory_space<vmem>>, vector<8x256xf32>,
    return
  }
  func.func @transform_0(%arg0: i32) -> (i32, i32) {
    %c0_i32 = arith.constant 0 : i32
    %c0_i32_0 = arith.constant 0 : i32
    %c0_i32_1 = arith.constant 0 : i32
    return %c0_i32, %c0_i32_0 : i32, i32
  }
  func.func @transform_1(%arg0: i32) -> (i32, i32) {
    %c0_i32 = arith.constant 0 : i32
    %c0_i32_0 = arith.constant 0 : i32
    return %c0_i32, %arg0 : i32, i32
  }
  func.func @transform_2(%arg0: i32) -> (i32, i32) {
    %c0_i32 = arith.constant 0 : i32
    %c0_i32_0 = arith.constant 0 : i32
    return %c0_i32, %arg0 : i32, i32
  }
  func.func @transform_3(%arg0: i32) -> (i32, i32) {
    %c0_i32 = arith.constant 0 : i32
    %c0_i32_0 = arith.constant 0 : i32
    return %c0_i32, %arg0 : i32, i32
  }
}

module attributes {stable_mosaic.version = 11 : i64} {
  func.func @attn_lstm_kernel(%arg0: i32, %arg1: memref<8x32xf32, #tpu.memory_space<vmem>>, %arg2: memref<8x32xf32, #tpu.memory_space<vmem>>, %arg3: memref<128x32xbf16, #tpu.memory_space<vmem>>, %arg4: memref<8x16xf32, #tpu.memory_space<vmem>>, %arg5: memref<32x32xbf16, #tpu.memory_space<vmem>>, %arg6: memref<32x32xbf16, #tpu.memory_space<vmem>>, %arg7: memref<1x32xf32, #tpu.memory_space<vmem>>, %arg8: memref<1x32xf32, #tpu.memory_space<vmem>>, %arg9: memref<32x128xbf16, #tpu.memory_space<vmem>>, %arg10: memref<32x128xbf16, #tpu.memory_space<vmem>>, %arg11: memref<32x128xbf16, #tpu.memory_space<vmem>>, %arg12: memref<1x128xf32, #tpu.memory_space<vmem>>, %arg13: memref<8x96xbf16, #tpu.memory_space<vmem>>, %arg14: memref<8x32xf32, #tpu.memory_space<vmem>>, %arg15: memref<8x16xf32, #tpu.memory_space<vmem>>) attributes {dimension_semantics = [#tpu.dimension_semantics<arbitrary>], iteration_bounds = array<i64: 1>, scalar_prefetch = 0 : i64, scratch_operands = 0 : i64, tpu.core_type = #tpu.core_type<tc>, window_params = [{pipeline_mode = #tpu.pipeline_mode<synchronous>, transform_indices = @transform_0, window_bounds = array<i64: 8, 32>}, {pipeline_mode = #tpu.pipeline_mode<synchronous>, transform_indices = @transform_1, window_bounds = array<i64: 8, 32>}, {pipeline_mode = #tpu.pipeline_mode<synchronous>, transform_indices = @transform_2, window_bounds = array<i64: 128, 32>}, {pipeline_mode = #tpu.pipeline_mode<synchronous>, transform_indices = @transform_3, window_bounds = array<i64: 8, 16>}, {pipeline_mode = #tpu.pipeline_mode<synchronous>, transform_indices = @transform_4, window_bounds = array<i64: 32, 32>}, {pipeline_mode = #tpu.pipeline_mode<synchronous>, transform_indices = @transform_5, window_bounds = array<i64: 32, 32>}, {pipeline_mode = #tpu.pipeline_mode<synchronous>, transform_indices = @transform_6, window_bounds = array<i64: 1, 32>}, {pipeline_mode = #tpu.pipeline_mode<synchronous>, transform_indices = @transform_7, window_bounds = array<i64: 1, 32>}, {pipeline_mode = #tpu.pipeline_mode<synchronous>, transform_indices = @transform_8, window_bounds = array<i64: 32, 128>}, {pipeline_mode = #tpu.pipeline_mode<synchronous>, transform_indices = @transform_9, window_bounds = array<i64: 32, 128>}, {pipeline_mode = #tpu.pipeline_mode<synchronous>, transform_indices = @transform_10, window_bounds = array<i64: 32, 128>}, {pipeline_mode = #tpu.pipeline_mode<synchronous>, transform_indices = @transform_11, window_bounds = array<i64: 1, 128>}, {pipeline_mode = #tpu.pipeline_mode<synchronous>, transform_indices = @transform_12, window_bounds = array<i64: 8, 96>}, {pipeline_mode = #tpu.pipeline_mode<synchronous>, transform_indices = @transform_13, window_bounds = array<i64: 8, 32>}, {pipeline_mode = #tpu.pipeline_mode<synchronous>, transform_indices = @transform_14, window_bounds = array<i64: 8, 16>}]} {
    %c0 = arith.constant 0 : index
    %c0_0 = arith.constant 0 : index
    %0 = vector.load %arg1[%c0, %c0_0] : memref<8x32xf32, #tpu.memory_space<vmem>>, vector<8x32xf32>
    %c0_1 = arith.constant 0 : index
    %c0_2 = arith.constant 0 : index
    %1 = vector.load %arg2[%c0_1, %c0_2] : memref<8x32xf32, #tpu.memory_space<vmem>>, vector<8x32xf32>
    %c0_3 = arith.constant 0 : index
    %c0_4 = arith.constant 0 : index
    %2 = vector.load %arg3[%c0_3, %c0_4] : memref<128x32xbf16, #tpu.memory_space<vmem>>, vector<128x32xbf16>
    %c0_5 = arith.constant 0 : index
    %c0_6 = arith.constant 0 : index
    %3 = vector.load %arg4[%c0_5, %c0_6] : memref<8x16xf32, #tpu.memory_space<vmem>>, vector<8x16xf32>
    %4 = arith.truncf %0 : vector<8x32xf32> to vector<8x32xbf16>
    %5 = arith.truncf %1 : vector<8x32xf32> to vector<8x32xbf16>
    %c0_7 = arith.constant 0 : index
    %c0_8 = arith.constant 0 : index
    %6 = vector.load %arg5[%c0_7, %c0_8] : memref<32x32xbf16, #tpu.memory_space<vmem>>, vector<32x32xbf16>
    %cst = arith.constant dense<0.000000e+00> : vector<8x32xf32>
    %7 = tpu.matmul %5, %6, %cst {dimension_numbers = #tpu.dot_dimension_numbers<[1], [0], [0], [1], [0, 0, 1, 1], [], []>} : vector<8x32xbf16>, vector<32x32xbf16>, vector<8x32xf32> -> vector<8x32xf32>
    %c0_9 = arith.constant 0 : index
    %c0_10 = arith.constant 0 : index
    %8 = vector.load %arg6[%c0_9, %c0_10] : memref<32x32xbf16, #tpu.memory_space<vmem>>, vector<32x32xbf16>
    %cst_11 = arith.constant dense<0.000000e+00> : vector<128x32xf32>
    %9 = tpu.matmul %2, %8, %cst_11 {dimension_numbers = #tpu.dot_dimension_numbers<[1], [0], [0], [1], [0, 0, 1, 1], [], []>} : vector<128x32xbf16>, vector<32x32xbf16>, vector<128x32xf32> -> vector<128x32xf32>
    %10 = vector.shape_cast %9 : vector<128x32xf32> to vector<8x16x32xf32>
    %11 = vector.shape_cast %7 : vector<8x32xf32> to vector<8x1x32xf32>
    %12 = vector.broadcast %11 : vector<8x1x32xf32> to vector<8x16x32xf32>
    %13 = arith.addf %10, %12 : vector<8x16x32xf32>
    %c0_12 = arith.constant 0 : index
    %c0_13 = arith.constant 0 : index
    %14 = vector.load %arg7[%c0_12, %c0_13] : memref<1x32xf32, #tpu.memory_space<vmem>>, vector<1x32xf32>
    %15 = vector.shape_cast %14 : vector<1x32xf32> to vector<1x1x32xf32>
    %16 = vector.broadcast %15 : vector<1x1x32xf32> to vector<8x16x32xf32>
    %17 = arith.addf %13, %16 : vector<8x16x32xf32>
    %18 = math.tanh %17 : vector<8x16x32xf32>
    %c0_14 = arith.constant 0 : index
    %c0_15 = arith.constant 0 : index
    %19 = vector.load %arg8[%c0_14, %c0_15] : memref<1x32xf32, #tpu.memory_space<vmem>>, vector<1x32xf32>
    %20 = vector.shape_cast %19 : vector<1x32xf32> to vector<1x1x32xf32>
    %21 = vector.broadcast %20 : vector<1x1x32xf32> to vector<8x16x32xf32>
    %22 = arith.mulf %18, %21 : vector<8x16x32xf32>
    %cst_16 = arith.constant dense<0.000000e+00> : vector<8x16xf32>
    %23 = vector.multi_reduction <add>, %22, %cst_16 [2] : vector<8x16x32xf32> to vector<8x16xf32>
    %24 = arith.addf %23, %3 : vector<8x16xf32>
    %cst_17 = arith.constant dense<0xFF800000> : vector<8xf32>
    %25 = vector.multi_reduction <maximumf>, %24, %cst_17 [1] : vector<8x16xf32> to vector<8xf32>
    %26 = vector.shape_cast %25 : vector<8xf32> to vector<8x1xf32>
    %27 = vector.broadcast %26 : vector<8x1xf32> to vector<8x16xf32>
    %28 = arith.subf %24, %27 : vector<8x16xf32>
    %29 = math.exp %28 : vector<8x16xf32>
    %cst_18 = arith.constant dense<0.000000e+00> : vector<8xf32>
    %30 = vector.multi_reduction <add>, %29, %cst_18 [1] : vector<8x16xf32> to vector<8xf32>
    %31 = vector.shape_cast %30 : vector<8xf32> to vector<8x1xf32>
    %32 = vector.broadcast %31 : vector<8x1xf32> to vector<8x16xf32>
    %33 = arith.divf %29, %32 : vector<8x16xf32>
    %c0_19 = arith.constant 0 : index
    %c0_20 = arith.constant 0 : index
    %34 = vector.load %arg15[%c0_19, %c0_20] : memref<8x16xf32, #tpu.memory_space<vmem>>, vector<8x16xf32>
    tpu.vector_store %arg15[%c0_19, %c0_20], %33 {strides = array<i32>} : memref<8x16xf32, #tpu.memory_space<vmem>>, vector<8x16xf32>,
    %35 = arith.extf %2 : vector<128x32xbf16> to vector<128x32xf32>
    %36 = vector.shape_cast %35 : vector<128x32xf32> to vector<8x16x32xf32>
    %37 = vector.shape_cast %33 : vector<8x16xf32> to vector<8x16x1xf32>
    %38 = vector.broadcast %37 : vector<8x16x1xf32> to vector<8x16x32xf32>
    %39 = arith.mulf %38, %36 : vector<8x16x32xf32>
    %cst_21 = arith.constant dense<0.000000e+00> : vector<8x32xf32>
    %40 = vector.multi_reduction <add>, %39, %cst_21 [1] : vector<8x16x32xf32> to vector<8x32xf32>
    %41 = arith.truncf %40 : vector<8x32xf32> to vector<8x32xbf16>
    %c0_22 = arith.constant 0 : index
    %c0_23 = arith.constant 0 : index
    %42 = vector.load %arg9[%c0_22, %c0_23] : memref<32x128xbf16, #tpu.memory_space<vmem>>, vector<32x128xbf16>
    %cst_24 = arith.constant dense<0.000000e+00> : vector<8x128xf32>
    %43 = tpu.matmul %4, %42, %cst_24 {dimension_numbers = #tpu.dot_dimension_numbers<[1], [0], [0], [1], [0, 0, 1, 1], [], []>} : vector<8x32xbf16>, vector<32x128xbf16>, vector<8x128xf32> -> vector<8x128xf32>
    %c0_25 = arith.constant 0 : index
    %c0_26 = arith.constant 0 : index
    %44 = vector.load %arg10[%c0_25, %c0_26] : memref<32x128xbf16, #tpu.memory_space<vmem>>, vector<32x128xbf16>
    %cst_27 = arith.constant dense<0.000000e+00> : vector<8x128xf32>
    %45 = tpu.matmul %41, %44, %cst_27 {dimension_numbers = #tpu.dot_dimension_numbers<[1], [0], [0], [1], [0, 0, 1, 1], [], []>} : vector<8x32xbf16>, vector<32x128xbf16>, vector<8x128xf32> -> vector<8x128xf32>
    %46 = arith.addf %43, %45 : vector<8x128xf32>
    %c0_28 = arith.constant 0 : index
    %c0_29 = arith.constant 0 : index
    %47 = vector.load %arg11[%c0_28, %c0_29] : memref<32x128xbf16, #tpu.memory_space<vmem>>, vector<32x128xbf16>
    %cst_30 = arith.constant dense<0.000000e+00> : vector<8x128xf32>
    %48 = tpu.matmul %5, %47, %cst_30 {dimension_numbers = #tpu.dot_dimension_numbers<[1], [0], [0], [1], [0, 0, 1, 1], [], []>} : vector<8x32xbf16>, vector<32x128xbf16>, vector<8x128xf32> -> vector<8x128xf32>
    %49 = arith.addf %46, %48 : vector<8x128xf32>
    %c0_31 = arith.constant 0 : index
    %c0_32 = arith.constant 0 : index
    %50 = vector.load %arg12[%c0_31, %c0_32] : memref<1x128xf32, #tpu.memory_space<vmem>>, vector<1x128xf32>
    %51 = vector.broadcast %50 : vector<1x128xf32> to vector<8x128xf32>
    %52 = arith.addf %49, %51 : vector<8x128xf32>
    %53 = vector.extract_strided_slice %52 {offsets = [0, 0], sizes = [8, 32], strides = [1, 1]} : vector<8x128xf32> to vector<8x32xf32>
    %54 = arith.negf %53 : vector<8x32xf32>
    %55 = math.exp %54 : vector<8x32xf32>
    %cst_33 = arith.constant 1.000000e+00 : f32
    %56 = vector.broadcast %cst_33 : f32 to vector<8x32xf32>
    %57 = arith.addf %56, %55 : vector<8x32xf32>
    %58 = arith.divf %56, %57 : vector<8x32xf32>
    %59 = vector.extract_strided_slice %52 {offsets = [0, 64], sizes = [8, 32], strides = [1, 1]} : vector<8x128xf32> to vector<8x32xf32>
    %60 = math.tanh %59 : vector<8x32xf32>
    %61 = vector.extract_strided_slice %52 {offsets = [0, 96], sizes = [8, 32], strides = [1, 1]} : vector<8x128xf32> to vector<8x32xf32>
    %62 = arith.negf %61 : vector<8x32xf32>
    %63 = math.exp %62 : vector<8x32xf32>
    %cst_34 = arith.constant 1.000000e+00 : f32
    %64 = vector.broadcast %cst_34 : f32 to vector<8x32xf32>
    %65 = arith.addf %64, %63 : vector<8x32xf32>
    %66 = arith.divf %64, %65 : vector<8x32xf32>
    %67 = arith.mulf %58, %60 : vector<8x32xf32>
    %68 = math.tanh %67 : vector<8x32xf32>
    %69 = arith.mulf %66, %68 : vector<8x32xf32>
    %c0_35 = arith.constant 0 : index
    %c0_36 = arith.constant 0 : index
    %70 = vector.load %arg14[%c0_35, %c0_36] : memref<8x32xf32, #tpu.memory_space<vmem>>, vector<8x32xf32>
    tpu.vector_store %arg14[%c0_35, %c0_36], %69 {strides = array<i32>} : memref<8x32xf32, #tpu.memory_space<vmem>>, vector<8x32xf32>,
    %71 = arith.truncf %69 : vector<8x32xf32> to vector<8x32xbf16>
    %c0_37 = arith.constant 0 : index
    %c0_38 = arith.constant 0 : index
    %72 = vector.load %arg13[%c0_37, %c0_38] : memref<8x96xbf16, #tpu.memory_space<vmem>>, vector<8x32xbf16>
    tpu.vector_store %arg13[%c0_37, %c0_38], %71 {strides = array<i32>} : memref<8x96xbf16, #tpu.memory_space<vmem>>, vector<8x32xbf16>,
    %c0_39 = arith.constant 0 : index
    %c32 = arith.constant 32 : index
    %73 = vector.load %arg13[%c0_39, %c32] : memref<8x96xbf16, #tpu.memory_space<vmem>>, vector<8x32xbf16>
    tpu.vector_store %arg13[%c0_39, %c32], %41 {strides = array<i32>} : memref<8x96xbf16, #tpu.memory_space<vmem>>, vector<8x32xbf16>,
    %c0_40 = arith.constant 0 : index
    %c64 = arith.constant 64 : index
    %74 = vector.load %arg13[%c0_40, %c64] : memref<8x96xbf16, #tpu.memory_space<vmem>>, vector<8x32xbf16>
    tpu.vector_store %arg13[%c0_40, %c64], %4 {strides = array<i32>} : memref<8x96xbf16, #tpu.memory_space<vmem>>, vector<8x32xbf16>,
    return
  }
  func.func @transform_0(%arg0: i32) -> (i32, i32) {
    %c0_i32 = arith.constant 0 : i32
    %c0_i32_0 = arith.constant 0 : i32
    %c0_i32_1 = arith.constant 0 : i32
    return %c0_i32, %c0_i32_0 : i32, i32
  }
  func.func @transform_1(%arg0: i32) -> (i32, i32) {
    %c0_i32 = arith.constant 0 : i32
    %c0_i32_0 = arith.constant 0 : i32
    %c0_i32_1 = arith.constant 0 : i32
    return %c0_i32, %c0_i32_0 : i32, i32
  }
  func.func @transform_2(%arg0: i32) -> (i32, i32) {
    %c0_i32 = arith.constant 0 : i32
    %c0_i32_0 = arith.constant 0 : i32
    %c0_i32_1 = arith.constant 0 : i32
    return %c0_i32, %c0_i32_0 : i32, i32
  }
  func.func @transform_3(%arg0: i32) -> (i32, i32) {
    %c0_i32 = arith.constant 0 : i32
    %c0_i32_0 = arith.constant 0 : i32
    %c0_i32_1 = arith.constant 0 : i32
    return %c0_i32, %c0_i32_0 : i32, i32
  }
  func.func @transform_4(%arg0: i32) -> (i32, i32) {
    %c0_i32 = arith.constant 0 : i32
    %c0_i32_0 = arith.constant 0 : i32
    %c0_i32_1 = arith.constant 0 : i32
    return %c0_i32, %c0_i32_0 : i32, i32
  }
  func.func @transform_5(%arg0: i32) -> (i32, i32) {
    %c0_i32 = arith.constant 0 : i32
    %c0_i32_0 = arith.constant 0 : i32
    %c0_i32_1 = arith.constant 0 : i32
    return %c0_i32, %c0_i32_0 : i32, i32
  }
  func.func @transform_6(%arg0: i32) -> (i32, i32) {
    %c0_i32 = arith.constant 0 : i32
    %c0_i32_0 = arith.constant 0 : i32
    %c0_i32_1 = arith.constant 0 : i32
    return %c0_i32, %c0_i32_0 : i32, i32
  }
  func.func @transform_7(%arg0: i32) -> (i32, i32) {
    %c0_i32 = arith.constant 0 : i32
    %c0_i32_0 = arith.constant 0 : i32
    %c0_i32_1 = arith.constant 0 : i32
    return %c0_i32, %c0_i32_0 : i32, i32
  }
  func.func @transform_8(%arg0: i32) -> (i32, i32) {
    %c0_i32 = arith.constant 0 : i32
    %c0_i32_0 = arith.constant 0 : i32
    %c0_i32_1 = arith.constant 0 : i32
    return %c0_i32, %c0_i32_0 : i32, i32
  }
  func.func @transform_9(%arg0: i32) -> (i32, i32) {
    %c0_i32 = arith.constant 0 : i32
    %c0_i32_0 = arith.constant 0 : i32
    %c0_i32_1 = arith.constant 0 : i32
    return %c0_i32, %c0_i32_0 : i32, i32
  }
  func.func @transform_10(%arg0: i32) -> (i32, i32) {
    %c0_i32 = arith.constant 0 : i32
    %c0_i32_0 = arith.constant 0 : i32
    %c0_i32_1 = arith.constant 0 : i32
    return %c0_i32, %c0_i32_0 : i32, i32
  }
  func.func @transform_11(%arg0: i32) -> (i32, i32) {
    %c0_i32 = arith.constant 0 : i32
    %c0_i32_0 = arith.constant 0 : i32
    %c0_i32_1 = arith.constant 0 : i32
    return %c0_i32, %c0_i32_0 : i32, i32
  }
  func.func @transform_12(%arg0: i32) -> (i32, i32) {
    %c0_i32 = arith.constant 0 : i32
    %c0_i32_0 = arith.constant 0 : i32
    %c0_i32_1 = arith.constant 0 : i32
    return %c0_i32, %c0_i32_0 : i32, i32
  }
  func.func @transform_13(%arg0: i32) -> (i32, i32) {
    %c0_i32 = arith.constant 0 : i32
    %c0_i32_0 = arith.constant 0 : i32
    %c0_i32_1 = arith.constant 0 : i32
    return %c0_i32, %c0_i32_0 : i32, i32
  }
  func.func @transform_14(%arg0: i32) -> (i32, i32) {
    %c0_i32 = arith.constant 0 : i32
    %c0_i32_0 = arith.constant 0 : i32
    %c0_i32_1 = arith.constant 0 : i32
    return %c0_i32, %c0_i32_0 : i32, i32
  }
}

</mosaic_0001>

<bundles_post_ra>
// kernel: lstm_decoder_forward.3
= control target key start
LH: loop header
LB: loop body
LE: loop exit
PB: predicated region body
PF: predicated region fallthrough
CT: control target
= control target key end

     0   :  { %v219_v2 = vmov 0   ;;  %s295_s0 = inlined_call_operand.vmem [shape: bf16[8,96], index: 0, kind: input, shape index: {}]   ;;  %s296_s1 = inlined_call_operand.vmem [shape: bf16[96,256], index: 1, kind: input, shape index: {}]   ;;  %s297_s2 = inlined_call_operand.vmem [shape: f32[1,256], index: 2, kind: input, shape index: {}]   ;;  %s298_s3 = inlined_call_operand.hbm [shape: f32[8,256], index: 3, kind: output, shape index: {}]  }
   0x1   :  { %v177_v0 = vld [vmem:[%s296_s1 + $0x4] ss:$8 sps:$4 sm:$0xff]   ;;  %v179_v1 = vld [vmem:[%s296_s1] ss:$8 sps:$4 sm:$0xff]   ;;  %137 = vmatprep.mubr.bf16.mxu0 %v219_v2  ;;  %v180_v3 = vld [vmem:[%s296_s1 + $0x14] ss:$8 sps:$4 sm:$0xff]  }
   0x2   :  { %105 = vmatprep.subr.bf16.mxu0 %v177_v0  ;;  %v182_v4 = vld [vmem:[%s296_s1 + $0x10] ss:$8 sps:$4 sm:$0xff]   ;;  %v183_v5 = vld [vmem:[%s296_s1 + $0x24] ss:$8 sps:$4 sm:$0xff]   ;;  %v185_v6 = vld [vmem:[%s296_s1 + $0x20] ss:$8 sps:$4 sm:$0xff]  }
   0x3   :  { %106 = vmatpush1.bf16.msra.mxu0 %v179_v1  ;;  %v186_v7 = vld [vmem:[%s296_s1 + $0x34] ss:$8 sps:$4 sm:$0xff]  }
   0x4   :  { %107 = vmatprep.subr.bf16.mxu0 %v180_v3 }
   0x7   :  { %108 = vmatpush1.bf16.msra.mxu0 %v182_v4 }
   0x8   :  { %109 = vmatprep.subr.bf16.mxu0 %v183_v5 }
   0x9   :  { %8 = vsyncpa [#allocation3], 0  ;;  %v188_v8 = vld [vmem:[%s296_s1 + $0x30] ss:$8 sps:$4 sm:$0xff]   ;;  %v189_v9 = vld [vmem:[%s296_s1 + $0x44] ss:$8 sps:$4 sm:$0xff]   ;;  %v31_v14 = vlaneseq }
   0xa   :  { %v191_v10 = vld [vmem:[%s296_s1 + $0x40] ss:$8 sps:$4 sm:$0xff]   ;;  %v192_v11 = vld [vmem:[%s296_s1 + $0x54] ss:$8 sps:$4 sm:$0xff]   ;;  %v194_v12 = vld [vmem:[%s296_s1 + $0x50] ss:$8 sps:$4 sm:$0xff]  }
   0xb   :  { %110 = vmatpush1.bf16.msra.mxu0 %v185_v6  ;;  %v16_v13 = vld [vmem:[%s295_s0] sm:$0xf]  ;;  %vm101_vm0 = vcmask 785408   ;;  %v32_v15 = vshrl.u32 %v31_v14, 7  ;;  %s220_s13 = smov [#allocation2]  }
   0xc   :  { %111 = vmatprep.subr.bf16.mxu0 %v186_v7  ;;  %v29_v17 = vld [vmem:[%s297_s2] sm:$0x3]  ;;  %s154_s1 = sshll.u32 %s220_s13, 4  ;;  %s155_s1 = int_to_ptr.vmem [resolvable:$true] %s154_s1 }
   0xd   :  { %v33_v16 = vsub.s32 0, %v32_v15  ;;  %v37_v18 = vsub.s32 1, %v32_v15  ;;  %s195_s0 = scalar_lea.vmem %s155_s1, 256  ;;  %p200_p1 = scmp.lt.s32.totalorder %s155_s1, %s155_s1 }
   0xe   :  { %p196_p0 = scmp.ne.s32.totalorder %s155_s1, %s195_s0  ;;  %p201_p2 = scmp.lt.s32.totalorder %s195_s0, %s195_s0 }
   0xf   :  { %112 = vmatpush1.bf16.msra.mxu0 %v188_v8  ;;  %v34_v19 = vrot.slane %v29_v17, %v33_v16  ;;  %v38_v20 = vrot.slane %v29_v17, %v37_v18 }
  0x10   :  { %113 = vmatprep.subr.bf16.mxu0 %v189_v9  ;;  %p202_p3 = por %p201_p2, %p200_p1 }
  0x12   :  { %p203_p4 = pnand %p202_p3, %p196_p0 }
  0x13   :  { %114 = vmatpush1.bf16.msra.mxu0 %v191_v10 }
  0x14   :  { %115 = vmatprep.subr.bf16.mxu0 %v192_v11 }
  0x17   :  { %116 = vmatpush1.bf16.msra.mxu0 %v194_v12 }
  0x1a   :  { %174 = vmatmul.mubr.msk.bf16.vlgmr.msra.gmra.mrb[0].mxu0 %vm101_vm0, %v16_v13 }
  0xed   :  { %v139_v21 = vpop.f32.mrb[0].mxu0 }
  0xee   :  { %v140_v22 = vadd.f32 %v139_v21, %v34_v19  ;;  %v141_v23 = vpop.f32.mrb[1].mxu0 }
  0xef   :  { %v142_v24 = vadd.f32 %v141_v23, %v38_v20  ;;  %v143_v25 = vpop.f32.mrb[2].mxu0 }
  0xf0   :  { %146 = vst [vmem:[#allocation2] sm:$0xff] %v140_v22  ;;  %v144_v26 = vpop.f32.mrb[3].mxu0 }
  0xf1   :  { %147 = vst [vmem:[#allocation2 + $0x8] sm:$0xff] %v142_v24 }
  0xf2   :  { %206 = shalt.err (!%p203_p4)
}
  0xf3   :  { %s207_s15 = scalar_lea.hbm %s298_s3, 256 }
  0xf4   :  { %p208_p5 = scmp.ne.s32.totalorder %s298_s3, %s207_s15  ;;  %p211_p6 = scmp.lt.u32.totalorder %s207_s15, %s298_s3 }
  0xf6   :  { %p213_p7 = pnand %p211_p6, %p208_p5 }
  0xf8   :  { %216 = shalt.err (!%p213_p7)
}
  0xf9   :  { %157 = dma.vmem_to_hbm [thread:$0]  %s155_s1, 256, %s298_s3, [#allocation3]  }
  0xfa   :  { %217 = dma.done.wait [#allocation3], 256  }
  0xfb   :  { %218 = vsyncadd [#allocation3], 4294967040 }
  0xfc   :  { %161 = vsyncpa [#allocation3], 1 }

// kernel: lstm_decoder_forward.2
= control target key start
LH: loop header
LB: loop body
LE: loop exit
PB: predicated region body
PF: predicated region fallthrough
CT: control target
= control target key end

     0   :  { %20 = vsyncpa [#allocation3], 0  ;;  %v310_v1 = vlaneseq  ;;  %v1992_v2 = vmov 0.0   ;;  %vm1993_vm0 = vmmov 0   ;;  %vm84_vm1 = vcmask 261120   ;;  %s2685_s0 = inlined_call_operand.vmem [shape: f32[8,32], index: 0, kind: input, shape index: {}]   ;;  %s2686_s1 = inlined_call_operand.vmem [shape: f32[8,32], index: 1, kind: input, shape index: {}]   ;;  %s2687_s2 = inlined_call_operand.vmem [shape: bf16[128,32], index: 2, kind: input, shape index: {}]   ;;  %s2688_s3 = inlined_call_operand.vmem [shape: f32[8,16], index: 3, kind: input, shape index: {}]   ;;  %s2689_s4 = inlined_call_operand.vmem [shape: bf16[32,32], index: 4, kind: input, shape index: {}]   ;;  %s2690_s5 = inlined_call_operand.vmem [shape: bf16[32,32], index: 5, kind: input, shape index: {}]   ;;  %s2691_s6 = inlined_call_operand.vmem [shape: f32[1,32], index: 6, kind: input, shape index: {}]   ;;  %s2692_s7 = inlined_call_operand.vmem [shape: f32[1,32], index: 7, kind: input, shape index: {}]   ;;  %s2693_s8 = inlined_call_operand.vmem [shape: bf16[32,128], index: 8, kind: input, shape index: {}]   ;;  %s2694_s9 = inlined_call_operand.vmem [shape: bf16[32,128], index: 9, kind: input, shape index: {}]   ;;  %s2695_s10 = inlined_call_operand.vmem [shape: bf16[32,128], index: 10, kind: input, shape index: {}]   ;;  %s2696_s11 = inlined_call_operand.vmem [shape: f32[1,128], index: 11, kind: input, shape index: {}]   ;;  %s2697_s12 = inlined_call_operand.vmem [shape: bf16[8,96], index: 12, kind: output, shape index: {0}]   ;;  %s2698_s13 = inlined_call_operand.hbm [shape: f32[8,32], index: 13, kind: output, shape index: {1}]   ;;  %s2699_s14 = inlined_call_operand.hbm [shape: f32[8,16], index: 14, kind: output, shape index: {2}]  }
   0x1   :  { %v1822_v0 = vld [vmem:[%s2689_s4] sm:$0xff]   ;;  %1759 = vmatprep.subr.bf16.mxu0 %v1992_v2  ;;  %v1824_v4 = vld [vmem:[%s2689_s4 + $0x8] sm:$0xff]   ;;  %1763 = vmatprep.mubr.msk.bf16.mxu0 %vm1993_vm0, %v1992_v2  ;;  %v53_v11 = vld [vmem:[%s2687_s2 + $0x10] sm:$0xff]  }
   0x2   :  { %v1823_v3 = vld [vmem:[%s2690_s5] sm:$0xff]   ;;  %1760 = vmatpush3.bf16.msra.mxu0 %v1822_v0  ;;  %v1825_v5 = vld [vmem:[%s2690_s5 + $0x8] sm:$0xff]   ;;  %v2093_v6 = vshrl.u32 %v310_v1, 7  ;;  %v55_v17 = vld [vmem:[%s2687_s2 + $0x18] sm:$0xff]  }
   0x3   :  { %1767 = vmatprep.subr.bf16.mxu1 %v1823_v3  ;;  %1761 = vmatprep.subr.bf16.mxu0 %v1992_v2  ;;  %v48_v7 = vld [vmem:[%s2686_s1] sm:$0xff]  ;;  %v51_v9 = vld [vmem:[%s2687_s2 + $0x8] sm:$0xff]  }
   0x4   :  { %1768 = vmatpush3.bf16.msra.mxu1 %v1823_v3  ;;  %v49_v8 = vld [vmem:[%s2687_s2] sm:$0xff]   ;;  %v2104_v10 = vpack.c.bf16 %v48_v7, %v48_v7  ;;  %v2116_v13 = vsub.s32 0, %v2093_v6  ;;  %v2120_v14 = vsub.s32 1, %v2093_v6  ;;  %v2127_v16 = vsub.s32 2, %v2093_v6 }
   0x5   :  { %1769 = vmatprep.subr.bf16.mxu1 %v1825_v5  ;;  %1771 = vmatprep.mubr.msk.bf16.mxu1 %vm84_vm1, %v49_v8  ;;  %v2113_v12 = vld [vmem:[%s2688_s3] sm:$0xff] }
   0x6   :  { %1762 = vmatpush3.bf16.msra.mxu0 %v1824_v4  ;;  %v525_v15 = vrot.slane %v2113_v12, %v2116_v13  ;;  %v536_v18 = vrot.slane %v2113_v12, %v2120_v14  ;;  %v57_v19 = vld [vmem:[%s2687_s2 + $0x20] sm:$0xff]  }
   0x7   :  { %1787 = vmatprep.subr.bf16.mxu0 %v1992_v2 }
   0x8   :  { %1770 = vmatpush3.bf16.msra.mxu1 %v1825_v5  ;;  %531 = vbcast.lane.b32.xlu1 %v525_v15, 264 }
   0x9   :  { %1764 = vmatmul.mubr.msk.bf16.vlgmr.msra.gmra.mrb[0].mxu0 %vm84_vm1, %v2104_v10  ;;  %527 = vbcast.lane.b32.xlu0 %v525_v15, 256 }
   0xa   :  { %1791 = vmatprep.mubr.msk.bf16.mxu0 %vm1993_vm0, %v1992_v2 }
   0xb   :  { %1772 = vmatmul.mubr.msk.bf16.vlgmr.msra.gmra.mrb[0].mxu1 %vm84_vm1, %v51_v9 }
   0xc   :  { %1775 = vmatprep.mubr.msk.bf16.mxu1 %vm84_vm1, %v53_v11 }
   0xd   :  { %21 = vsyncpa [#allocation5], 0  ;;  %v547_v20 = vrot.slane %v2113_v12, %v2127_v16  ;;  %v2144_v21 = vsub.s32 3, %v2093_v6  ;;  %538 = vbcast.lane.b32.xlu1 %v536_v18, 256  ;;  %v2149_v23 = vsub.s32 4, %v2093_v6  ;;  %v59_v24 = vld [vmem:[%s2687_s2 + $0x28] sm:$0xff]  }
   0xe   :  { %v61_v25 = vld [vmem:[%s2687_s2 + $0x30] sm:$0xff]   ;;  %v2162_v27 = vsub.s32 5, %v2093_v6  ;;  %v2167_v29 = vsub.s32 6, %v2093_v6  ;;  %v63_v30 = vld [vmem:[%s2687_s2 + $0x38] sm:$0xff]   ;;  %v1994_v32 = vmov 1966171168  }
   0xf   :  { %549 = vbcast.lane.b32.xlu0 %v547_v20, 256  ;;  %v558_v22 = vrot.slane %v2113_v12, %v2144_v21  ;;  %v569_v26 = vrot.slane %v2113_v12, %v2149_v23  ;;  %v308_v33 = vunpack.c.l.s4 %v1994_v32  ;;  %v2182_v51 = vld [vmem:[%s2691_s6] ss:$0 sm:$0xff]  ;;  %vm717_vm2 = vcmask 130112   ;;  %s1996_s26 = smov 64  }
  0x10   :  { %v580_v28 = vrot.slane %v2113_v12, %v2162_v27  ;;  %v591_v31 = vrot.slane %v2113_v12, %v2167_v29  ;;  %vm782_vm3 = vcmask 1041409   ;;  %vm784_vm4 = vcmask 1042434  }
  0x11   :  { %542 = vbcast.lane.b32.xlu1 %v536_v18, 264  ;;  %v309_v34 = vunpack.c.0.s8 %v308_v33  ;;  %v2200_v33 = vld [vmem:[%s2692_s7] ss:$0 sm:$0xff]  ;;  %vm786_vm5 = vcmask 1043459   ;;  %vm788_vm6 = vcmask 1044484   ;;  %vm790_vm7 = vcmask 1045509  }
  0x12   :  { %vm792_vm8 = vcmask 1046534   ;;  %vm794_vm9 = vcmask 1047559   ;;  %vm797_vm10 = vcmask 130048  }
  0x13   :  { %1776 = vmatmul.mubr.msk.bf16.gmra.mrb[4].mxu1 %vm84_vm1, %v55_v17  ;;  %560 = vbcast.lane.b32.xlu0 %v558_v22, 256  ;;  %v312_v35 = vsub.s32 %v309_v34, %v2093_v6 }
  0x14   :  { %1779 = vmatprep.mubr.msk.bf16.mxu1 %vm84_vm1, %v57_v19 }
  0x15   :  { %553 = vbcast.lane.b32.xlu1 %v547_v20, 264 }
  0x17   :  { %571 = vbcast.lane.b32.xlu0 %v569_v26, 256 }
  0x19   :  { %564 = vbcast.lane.b32.xlu1 %v558_v22, 264 }
  0x1b   :  { %1780 = vmatmul.mubr.msk.bf16.gmra.mrb[8].mxu1 %vm84_vm1, %v59_v24  ;;  %582 = vbcast.lane.b32.xlu0 %v580_v28, 256 }
  0x1c   :  { %1783 = vmatprep.mubr.msk.bf16.mxu1 %vm84_vm1, %v61_v25 }
  0x1d   :  { %575 = vbcast.lane.b32.xlu1 %v569_v26, 264 }
  0x1f   :  { %593 = vbcast.lane.b32.xlu0 %v591_v31, 256 }
  0x21   :  { %586 = vbcast.lane.b32.xlu1 %v580_v28, 264 }
  0x23   :  { %1784 = vmatmul.mubr.msk.bf16.gmra.mrb[12].mxu1 %vm84_vm1, %v63_v30 }
  0x25   :  { %597 = vbcast.lane.b32.xlu1 %v591_v31, 264 }
  0xdc   :  { %v122_v36 = vpop.f32.mrb[0].mxu0 }
  0xdd   :  { %v306_v37 = vcombine.high %v122_v36, %v122_v36  ;;  %v313_v38 = vrot.slane %v122_v36, %v312_v35  ;;  %v1765_v39 = vpop.f32.mrb[1].mxu0 }
  0xde   :  { %v125_v40 = vpop.f32.mrb[2].mxu0  ;;  %v1773_v41 = vpop.f32.mrb[0].mxu1 }
  0xdf   :  { %v321_v42 = vcombine.high %v313_v38, %v313_v38  ;;  %v329_v43 = vrot.slane %v313_v38, %v312_v35  ;;  %v1766_v44 = vpop.f32.mrb[3].mxu0  ;;  %v242_v45 = vpop.f32.mrb[1].mxu1  ;;  %v320_v46 = vrot.slane %v306_v37, %v312_v35 }
  0xe0   :  { %v1774_v47 = vpop.f32.mrb[2].mxu1 }
  0xe1   :  { %v343_v48 = vrot.slane %v321_v42, %v312_v35  ;;  %v358_v49 = vrot.slane %v329_v43, %v2116_v13  ;;  %v245_v50 = vpop.f32.mrb[3].mxu1  ;;  %v351_v52 = vcombine.high %v329_v43, %v329_v43  ;;  %v322_v57 = vcombine.high %v320_v46, %v320_v46 }
  0xe2   :  { %v336_v20 = vrot.slane %v320_v46, %v312_v35 }
  0xe3   :  { %v362_v53 = vrot.slane %v343_v48, %v2116_v13  ;;  %v395_v54 = vadd.f32 %v358_v49, %v242_v45  ;;  %v396_v55 = vadd.f32 %v358_v49, %v245_v50  ;;  %v353_v56 = vcombine.high %v343_v48, %v343_v48 }
  0xe4   :  { %v366_v0 = vrot.slane %v351_v52, %v2116_v13  ;;  %v350_v17 = vrot.slane %v322_v57, %v312_v35  ;;  %v374_v30 = vrot.slane %v336_v20, %v2116_v13  ;;  %v352_v44 = vcombine.high %v336_v20, %v336_v20 }
  0xe5   :  { %v397_v58 = vadd.f32 %v1773_v41, %v362_v53  ;;  %v418_v59 = vadd.f32 %v2182_v51, %v395_v54  ;;  %v398_v60 = vadd.f32 %v1774_v47, %v362_v53  ;;  %v419_v61 = vadd.f32 %v2182_v51, %v396_v55 }
  0xe6   :  { %v1777_v62 = vpop.f32.mrb[4].mxu1  ;;  %v370_v63 = vrot.slane %v353_v56, %v2116_v13  ;;  %v378_v26 = vrot.slane %v350_v17, %v2116_v13  ;;  %v354_v40 = vcombine.high %v350_v17, %v350_v17  ;;  %v382_v56 = vrot.slane %v352_v44, %v2116_v13 }
  0xe7   :  { %v420_v3 = vadd.f32 %v2182_v51, %v397_v58  ;;  %1848 = vtanh.f32 %v418_v59  ;;  %v421_v4 = vadd.f32 %v2182_v51, %v398_v60  ;;  %v258_v5 = vpop.f32.mrb[5].mxu1 }
  0xe8   :  { %1850 = vtanh.f32 %v419_v61  ;;  %v401_v7 = vadd.f32 %v1777_v62, %v370_v63  ;;  %v399_v8 = vadd.f32 %v366_v0, %v258_v5  ;;  %v1778_v9 = vpop.f32.mrb[6].mxu1  ;;  %v386_v54 = vrot.slane %v354_v40, %v2116_v13 }
  0xe9   :  { %1852 = vtanh.f32 %v420_v3  ;;  %v402_v11 = vadd.f32 %v1778_v9, %v370_v63  ;;  %v261_v15 = vpop.f32.mrb[7].mxu1  ;;  %v1995_v40 = vmov 0  }
  0xea   :  { %1854 = vtanh.f32 %v421_v4  ;;  %v422_v18 = vadd.f32 %v2182_v51, %v399_v8  ;;  %v400_v19 = vadd.f32 %v366_v0, %v261_v15  ;;  %v424_v22 = vadd.f32 %v2182_v51, %v401_v7  ;;  %1820 = vset.pattern.permute.xlu0 %v1995_v40  ;;  %1821 = vset.pattern.permute.xlu1 %v1995_v40 }
  0xeb   :  { %v425_v24 = vadd.f32 %v2182_v51, %v402_v11 }
  0xec   :  { %1856 = vtanh.f32 %v422_v18  ;;  %v423_v25 = vadd.f32 %v2182_v51, %v400_v19 }
  0xed   :  { %1858 = vtanh.f32 %v425_v24 }
  0xee   :  { %v1781_v28 = vpop.f32.mrb[8].mxu1  ;;  %1860 = vtanh.f32 %v424_v22 }
  0xef   :  { %v405_v31 = vadd.f32 %v1781_v28, %v378_v26  ;;  %v274_v32 = vpop.f32.mrb[9].mxu1  ;;  %1862 = vtanh.f32 %v423_v25 }
  0xf0   :  { %v403_v34 = vadd.f32 %v374_v30, %v274_v32  ;;  %v1782_v35 = vpop.f32.mrb[10].mxu1 }
  0xf1   :  { %v1849_v36 = vpop.eup %1848  ;;  %v428_v37 = vadd.f32 %v2182_v51, %v405_v31  ;;  %v406_v38 = vadd.f32 %v1782_v35, %v378_v26  ;;  %v277_v39 = vpop.f32.mrb[11].mxu1 }
  0xf2   :  { %v1851_v41 = vpop.eup %1850  ;;  %v404_v42 = vadd.f32 %v374_v30, %v277_v39  ;;  %v457_v43 = vmul.f32 %v1849_v36, %v2200_v33  ;;  %v426_v46 = vadd.f32 %v2182_v51, %v403_v34 }
  0xf3   :  { %v1853_v45 = vpop.eup %1852  ;;  %1864 = vtanh.f32 %v428_v37  ;;  %v429_v47 = vadd.f32 %v2182_v51, %v406_v38  ;;  %v458_v52 = vmul.f32 %v1851_v41, %v2200_v33 }
  0xf4   :  { %v1855_v48 = vpop.eup %1854  ;;  %v473_v49 = vsel %vm84_vm1, %v457_v43, 0.0  ;;  %v459_v50 = vmul.f32 %v1853_v45, %v2200_v33  ;;  %v427_v53 = vadd.f32 %v2182_v51, %v404_v42 }
  0xf5   :  { %1866 = vtanh.f32 %v429_v47  ;;  %474 = vadd.xlane.f32.xlu0 %v473_v49  ;;  %v460_v58 = vmul.f32 %v1855_v48, %v2200_v33  ;;  %v476_v3 = vsel %vm84_vm1, %v458_v52, 0.0 }
  0xf6   :  { %v1785_v55 = vpop.f32.mrb[12].mxu1  ;;  %v479_v57 = vsel %vm84_vm1, %v459_v50, 0.0  ;;  %v1857_v59 = vpop.eup %1856  ;;  %1868 = vtanh.f32 %v426_v46 }
  0xf7   :  { %v409_v60 = vadd.f32 %v1785_v55, %v386_v54  ;;  %v290_v61 = vpop.f32.mrb[13].mxu1  ;;  %480 = vadd.xlane.f32.xlu1 %v479_v57  ;;  %v1859_v62 = vpop.eup %1858  ;;  %v461_v4 = vmul.f32 %v1857_v59, %v2200_v33  ;;  %1870 = vtanh.f32 %v427_v53  ;;  %v482_v15 = vsel %vm84_vm1, %v460_v58, 0.0 }
  0xf8   :  { %v407_v63 = vadd.f32 %v382_v56, %v290_v61  ;;  %v1786_v0 = vpop.f32.mrb[14].mxu1  ;;  %v1861_v5 = vpop.eup %1860  ;;  %v464_v17 = vmul.f32 %v1859_v62, %v2200_v33  ;;  %v2245_v58 = vsub.s32 7, %v2093_v6 }
  0xf9   :  { %v432_v7 = vadd.f32 %v2182_v51, %v409_v60  ;;  %v410_v8 = vadd.f32 %v1786_v0, %v386_v54  ;;  %v293_v9 = vpop.f32.mrb[15].mxu1  ;;  %477 = vadd.xlane.f32.xlu0 %v476_v3  ;;  %v1863_v18 = vpop.eup %1862  ;;  %v485_v22 = vsel %vm84_vm1, %v461_v4, 0.0  ;;  %v463_v24 = vmul.f32 %v1861_v5, %v2200_v33 }
  0xfa   :  { %v408_v11 = vadd.f32 %v382_v56, %v293_v9  ;;  %v430_v19 = vadd.f32 %v2182_v51, %v407_v63  ;;  %v494_v28 = vsel %vm84_vm1, %v464_v17, 0.0  ;;  %v462_v30 = vmul.f32 %v1863_v18, %v2200_v33  ;;  %v532_v60 = vpop.permute.xlu1 %531  ;;  %v528_v62 = vpop.permute.xlu0 %527 }
  0xfb   :  { %1872 = vtanh.f32 %v432_v7  ;;  %v433_v20 = vadd.f32 %v2182_v51, %v410_v8  ;;  %483 = vadd.xlane.f32.xlu1 %v482_v15  ;;  %v491_v32 = vsel %vm84_vm1, %v463_v24, 0.0  ;;  %v602_v59 = vrot.slane %v2113_v12, %v2245_v58 }
  0xfc   :  { %v431_v26 = vadd.f32 %v2182_v51, %v408_v11  ;;  %v488_v36 = vsel %vm84_vm1, %v462_v30, 0.0 }
  0xfd   :  { %v1865_v25 = vpop.eup %1864  ;;  %1874 = vtanh.f32 %v433_v20  ;;  %486 = vadd.xlane.f32.xlu0 %v485_v22 }
  0xfe   :  { %1876 = vtanh.f32 %v430_v19  ;;  %v467_v34 = vmul.f32 %v1865_v25, %v2200_v33  ;;  %v539_v61 = vpop.permute.xlu1 %538 }
  0xff   :  { %v1867_v31 = vpop.eup %1866  ;;  %495 = vadd.xlane.f32.xlu1 %v494_v28  ;;  %1878 = vtanh.f32 %v431_v26 }
 0x100   :  { %v1869_v35 = vpop.eup %1868  ;;  %v468_v37 = vmul.f32 %v1867_v31, %v2200_v33  ;;  %v503_v38 = vsel %vm84_vm1, %v467_v34, 0.0 }
 0x101   :  { %492 = vadd.xlane.f32.xlu0 %v491_v32  ;;  %v1871_v51 = vpop.eup %1870  ;;  %v465_v39 = vmul.f32 %v1869_v35, %v2200_v33 }
 0x102   :  { %v506_v42 = vsel %vm84_vm1, %v468_v37, 0.0  ;;  %v466_v43 = vmul.f32 %v1871_v51, %v2200_v33  ;;  %v543_v63 = vpop.permute.xlu1 %542 }
 0x103   :  { %489 = vadd.xlane.f32.xlu1 %v488_v36  ;;  %v497_v45 = vsel %vm84_vm1, %v465_v39, 0.0 }
 0x104   :  { %v500_v48 = vsel %vm84_vm1, %v466_v43, 0.0 }
 0x105   :  { %v1873_v41 = vpop.eup %1872  ;;  %504 = vadd.xlane.f32.xlu0 %v503_v38 }
 0x106   :  { %v471_v46 = vmul.f32 %v1873_v41, %v2200_v33  ;;  %v554_v0 = vpop.permute.xlu1 %553 }
 0x107   :  { %v1875_v44 = vpop.eup %1874  ;;  %507 = vadd.xlane.f32.xlu1 %v506_v42 }
 0x108   :  { %v1877_v47 = vpop.eup %1876  ;;  %v472_v49 = vmul.f32 %v1875_v44, %v2200_v33  ;;  %v515_v52 = vsel %vm84_vm1, %v471_v46, 0.0 }
 0x109   :  { %498 = vadd.xlane.f32.xlu0 %v497_v45  ;;  %v1879_v50 = vpop.eup %1878  ;;  %v469_v53 = vmul.f32 %v1877_v47, %v2200_v33 }
 0x10a   :  { %v518_v54 = vsel %vm84_vm1, %v472_v49, 0.0  ;;  %v470_v55 = vmul.f32 %v1879_v50, %v2200_v33  ;;  %v550_v33 = vpop.permute.xlu0 %549  ;;  %v565_v4 = vpop.permute.xlu1 %564 }
 0x10b   :  { %501 = vadd.xlane.f32.xlu1 %v500_v48  ;;  %v509_v56 = vsel %vm84_vm1, %v469_v53, 0.0 }
 0x10c   :  { %v512_v57 = vsel %vm84_vm1, %v470_v55, 0.0 }
 0x10d   :  { %516 = vadd.xlane.f32.xlu0 %v515_v52 }
 0x10e   :  { %v561_v3 = vpop.permute.xlu0 %560  ;;  %v576_v7 = vpop.permute.xlu1 %575 }
 0x10f   :  { %519 = vadd.xlane.f32.xlu1 %v518_v54 }
 0x111   :  { %510 = vadd.xlane.f32.xlu0 %v509_v56 }
 0x112   :  { %v572_v5 = vpop.permute.xlu0 %571  ;;  %v587_v9 = vpop.permute.xlu1 %586 }
 0x113   :  { %513 = vadd.xlane.f32.xlu1 %v512_v57 }
 0x116   :  { %v583_v8 = vpop.permute.xlu0 %582  ;;  %v598_v15 = vpop.permute.xlu1 %597 }
 0x11a   :  { %v594_v11 = vpop.permute.xlu0 %593 }
 0x124   :  { %608 = vbcast.lane.b32.xlu1 %v602_v59, 264 }
 0x127   :  { %604 = vbcast.lane.b32.xlu0 %v602_v59, 256 }
 0x182   :  { %v475_v17 = vpop.xlane.xlu0 %474 }
 0x183   :  { %v2249_v18 = vadd.f32 %v528_v62, %v475_v17  ;;  %v707_v62 = vand.u32 127, %v310_v1 }
 0x184   :  { %v481_v12 = vpop.xlane.xlu1 %480 }
 0x185   :  { %659 = vperm.xlu0 %1820, %v2249_v18   ;;  %v2257_v26 = vadd.f32 %v539_v61, %v481_v12 }
 0x186   :  { %v478_v19 = vpop.xlane.xlu0 %477 }
 0x187   :  { %v2252_v20 = vadd.f32 %v532_v60, %v478_v19 }
 0x188   :  { %v484_v22 = vpop.xlane.xlu1 %483 }
 0x189   :  { %v2254_v24 = vadd.f32 %v543_v63, %v484_v22  ;;  %662 = vperm.xlu1 %1821, %v2252_v20  }
 0x18a   :  { %v487_v25 = vpop.xlane.xlu0 %486 }
 0x18b   :  { %668 = vperm.xlu0 %1820, %v2254_v24   ;;  %v2263_v32 = vadd.f32 %v550_v33, %v487_v25  ;;  %v712_v33 = vadd.s32 4294967288, %v707_v62 }
 0x18c   :  { %v496_v28 = vpop.xlane.xlu1 %495 }
 0x18d   :  { %v2260_v30 = vadd.f32 %v565_v4, %v496_v28  ;;  %665 = vperm.xlu1 %1821, %v2257_v26   ;;  %v2302_v4 = vsub.s32 %v712_v33, %v2093_v6 }
 0x18e   :  { %v493_v31 = vpop.xlane.xlu0 %492 }
 0x18f   :  { %680 = vperm.xlu0 %1820, %v2260_v30   ;;  %v2269_v37 = vadd.f32 %v561_v3, %v493_v31  ;;  %v2299_v3 = vsub.s32 %v707_v62, %v2093_v6 }
 0x190   :  { %v490_v34 = vpop.xlane.xlu1 %489 }
 0x191   :  { %v2266_v35 = vadd.f32 %v554_v0, %v490_v34  ;;  %671 = vperm.xlu1 %1821, %v2263_v32  }
 0x192   :  { %v505_v36 = vpop.xlane.xlu0 %504 }
 0x193   :  { %674 = vperm.xlu0 %1820, %v2266_v35   ;;  %v2275_v40 = vadd.f32 %v583_v8, %v505_v36 }
 0x194   :  { %v508_v51 = vpop.xlane.xlu1 %507 }
 0x195   :  { %v2272_v38 = vadd.f32 %v587_v9, %v508_v51  ;;  %677 = vperm.xlu1 %1821, %v2269_v37  }
 0x196   :  { %v499_v39 = vpop.xlane.xlu0 %498 }
 0x197   :  { %692 = vperm.xlu0 %1820, %v2272_v38   ;;  %v2281_v44 = vadd.f32 %v572_v5, %v499_v39 }
 0x198   :  { %v502_v41 = vpop.xlane.xlu1 %501 }
 0x199   :  { %v2278_v42 = vadd.f32 %v576_v7, %v502_v41  ;;  %689 = vperm.xlu1 %1821, %v2275_v40  }
 0x19a   :  { %v517_v43 = vpop.xlane.xlu0 %516 }
 0x19b   :  { %686 = vperm.xlu0 %1820, %v2278_v42  }
 0x19c   :  { %v520_v45 = vpop.xlane.xlu1 %519 }
 0x19d   :  { %683 = vperm.xlu1 %1821, %v2281_v44  }
 0x19e   :  { %v511_v46 = vpop.xlane.xlu0 %510 }
 0x19f   :  { %v2285_v47 = vadd.f32 %v594_v11, %v511_v46 }
 0x1a0   :  { %v514_v48 = vpop.xlane.xlu1 %513 }
 0x1a1   :  { %v2287_v49 = vadd.f32 %v598_v15, %v514_v48  ;;  %695 = vperm.xlu1 %1821, %v2285_v47  }
 0x1a2   :  { %v605_v50 = vpop.permute.xlu0 %604 }
 0x1a3   :  { %v2290_v52 = vadd.f32 %v605_v50, %v517_v43  ;;  %698 = vperm.xlu0 %1820, %v2287_v49  }
 0x1a4   :  { %v609_v53 = vpop.permute.xlu1 %608 }
 0x1a5   :  { %v2293_v54 = vadd.f32 %v609_v53, %v520_v45  ;;  %701 = vperm.xlu1 %1821, %v2290_v52  }
 0x1a7   :  { %704 = vperm.xlu0 %1820, %v2293_v54  }
 0x204   :  { %v660_v55 = vpop.permute.xlu0 %659 }
 0x205   :  { %v711_v12 = vrot.slane %v660_v55, %v2299_v3 }
 0x208   :  { %v663_v56 = vpop.permute.xlu1 %662 }
 0x209   :  { %v716_v11 = vrot.slane %v663_v56, %v2302_v4 }
 0x20a   :  { %v669_v57 = vpop.permute.xlu0 %668 }
 0x20b   :  { %v726_v15 = vrot.slane %v669_v57, %v2302_v4  ;;  %v718_v31 = vsel %vm717_vm2, %v716_v11, %v711_v12 }
 0x20c   :  { %v666_v59 = vpop.permute.xlu1 %665 }
 0x20d   :  { %v722_v8 = vrot.slane %v666_v59, %v2299_v3 }
 0x20e   :  { %v681_v60 = vpop.permute.xlu0 %680 }
 0x20f   :  { %v727_v6 = vsel %vm717_vm2, %v726_v15, %v722_v8  ;;  %v744_v34 = vrot.slane %v681_v60, %v2302_v4 }
 0x210   :  { %v672_v61 = vpop.permute.xlu1 %671  ;;  %v783_v36 = vsel %vm782_vm3, %v727_v6, %v718_v31 }
 0x211   :  { %v731_v1 = vrot.slane %v672_v61, %v2299_v3 }
 0x212   :  { %v675_v63 = vpop.permute.xlu0 %674 }
 0x213   :  { %v735_v9 = vrot.slane %v675_v63, %v2302_v4 }
 0x214   :  { %v678_v0 = vpop.permute.xlu1 %677 }
 0x215   :  { %v740_v19 = vrot.slane %v678_v0, %v2299_v3  ;;  %v736_v25 = vsel %vm717_vm2, %v735_v9, %v731_v1 }
 0x216   :  { %v693_v5 = vpop.permute.xlu0 %692  ;;  %v785_v41 = vsel %vm784_vm4, %v736_v25, %v783_v36 }
 0x217   :  { %v745_v43 = vsel %vm717_vm2, %v744_v34, %v740_v19  ;;  %v762_v57 = vrot.slane %v693_v5, %v2302_v4 }
 0x218   :  { %v690_v7 = vpop.permute.xlu1 %689  ;;  %v787_v53 = vsel %vm786_vm5, %v745_v43, %v785_v41 }
 0x219   :  { %v758_v48 = vrot.slane %v690_v7, %v2299_v3 }
 0x21a   :  { %v687_v22 = vpop.permute.xlu0 %686 }
 0x21b   :  { %v753_v51 = vrot.slane %v687_v22, %v2302_v4  ;;  %v763_v62 = vsel %vm717_vm2, %v762_v57, %v758_v48 }
 0x21c   :  { %v684_v17 = vpop.permute.xlu1 %683 }
 0x21d   :  { %v749_v28 = vrot.slane %v684_v17, %v2299_v3 }
 0x21f   :  { %v754_v45 = vsel %vm717_vm2, %v753_v51, %v749_v28 }
 0x220   :  { %v696_v39 = vpop.permute.xlu1 %695  ;;  %v789_v59 = vsel %vm788_vm6, %v754_v45, %v787_v53 }
 0x221   :  { %v767_v55 = vrot.slane %v696_v39, %v2299_v3  ;;  %v791_v0 = vsel %vm790_vm7, %v763_v62, %v789_v59 }
 0x222   :  { %v699_v46 = vpop.permute.xlu0 %698 }
 0x223   :  { %v771_v50 = vrot.slane %v699_v46, %v2302_v4 }
 0x224   :  { %v702_v56 = vpop.permute.xlu1 %701 }
 0x225   :  { %v772_v60 = vsel %vm717_vm2, %v771_v50, %v767_v55  ;;  %v776_v63 = vrot.slane %v702_v56, %v2299_v3 }
 0x226   :  { %v705_v61 = vpop.permute.xlu0 %704  ;;  %v793_v5 = vsel %vm792_vm8, %v772_v60, %v791_v0 }
 0x227   :  { %v780_v33 = vrot.slane %v705_v61, %v2302_v4 }
 0x229   :  { %v781_v7 = vsel %vm717_vm2, %v780_v33, %v776_v63 }
 0x22a   :  { %v795_v8 = vsel %vm794_vm9, %v781_v7, %v793_v5 }
 0x22b   :  { %v798_v9 = vsel %vm797_vm10, %v795_v8, -inf }
 0x22c   :  { %799 = vmax.xlane.f32.xlu1 %v798_v9 }
 0x2b9   :  { %v800_v11 = vpop.xlane.xlu1 %799 }
 0x2ba   :  { %v805_v15 = vrot.slane %v800_v11, %v2116_v13  ;;  %v809_v17 = vrot.slane %v800_v11, %v2120_v14  ;;  %v821_v6 = vrot.slane %v800_v11, %v2149_v23  ;;  %v2344_v31 = vrot.slane %v800_v11, %v2245_v58 }
 0x2bb   :  { %v813_v34 = vrot.slane %v800_v11, %v2127_v16  ;;  %v817_v43 = vrot.slane %v800_v11, %v2144_v21 }
 0x2bc   :  { %v842_v1 = vsub.f32 %v2249_v18, %v805_v15  ;;  %v843_v12 = vsub.f32 %v2252_v20, %v805_v15  ;;  %v844_v22 = vsub.f32 %v2257_v26, %v809_v17  ;;  %v851_v28 = vsub.f32 %v2278_v42, %v821_v6 }
 0x2bd   :  { %v845_v18 = vsub.f32 %v2254_v24, %v809_v17  ;;  %v857_v20 = vsub.f32 %v2293_v54, %v2344_v31  ;;  %v846_v39 = vsub.f32 %v2263_v32, %v813_v34  ;;  %v847_v24 = vsub.f32 %v2266_v35, %v813_v34 }
 0x2be   :  { %v858_v19 = vmul.f32 1.442695, %v842_v1  ;;  %v860_v25 = vmul.f32 1.442695, %v843_v12  ;;  %v862_v36 = vmul.f32 1.442695, %v844_v22  ;;  %v848_v32 = vsub.f32 %v2269_v37, %v817_v43 }
 0x2bf   :  { %v876_v51 = vmul.f32 1.442695, %v851_v28  ;;  %v864_v26 = vmul.f32 1.442695, %v845_v18  ;;  %v888_v42 = vmul.f32 1.442695, %v857_v20  ;;  %v849_v53 = vsub.f32 %v2260_v30, %v817_v43 }
 0x2c0   :  { %1880 = vpow2.f32 %v858_v19  ;;  %v866_v45 = vmul.f32 1.442695, %v846_v39  ;;  %v868_v54 = vmul.f32 1.442695, %v847_v24  ;;  %v870_v35 = vmul.f32 1.442695, %v848_v32 }
 0x2c1   :  { %1882 = vpow2.f32 %v860_v25  ;;  %v825_v37 = vrot.slane %v800_v11, %v2162_v27  ;;  %v850_v56 = vsub.f32 %v2281_v44, %v821_v6  ;;  %v872_v57 = vmul.f32 1.442695, %v849_v53 }
 0x2c2   :  { %1884 = vpow2.f32 %v862_v36  ;;  %v829_v44 = vrot.slane %v800_v11, %v2167_v29 }
 0x2c3   :  { %1886 = vpow2.f32 %v876_v51  ;;  %v852_v30 = vsub.f32 %v2275_v40, %v825_v37  ;;  %v874_v61 = vmul.f32 1.442695, %v850_v56  ;;  %v853_v63 = vsub.f32 %v2272_v38, %v825_v37 }
 0x2c4   :  { %1888 = vpow2.f32 %v864_v26  ;;  %v854_v7 = vsub.f32 %v2285_v47, %v829_v44  ;;  %v855_v8 = vsub.f32 %v2287_v49, %v829_v44  ;;  %v856_v38 = vsub.f32 %v2290_v52, %v2344_v31 }
 0x2c5   :  { %1890 = vpow2.f32 %v888_v42  ;;  %v878_v33 = vmul.f32 1.442695, %v852_v30  ;;  %v880_v40 = vmul.f32 1.442695, %v853_v63 }
 0x2c6   :  { %1892 = vpow2.f32 %v866_v45  ;;  %v882_v9 = vmul.f32 1.442695, %v854_v7  ;;  %v884_v15 = vmul.f32 1.442695, %v855_v8  ;;  %v886_v1 = vmul.f32 1.442695, %v856_v38 }
 0x2c7   :  { %1894 = vpow2.f32 %v868_v54 }
 0x2c8   :  { %1896 = vpow2.f32 %v870_v35 }
 0x2c9   :  { %1898 = vpow2.f32 %v872_v57 }
 0x2ca   :  { %v2351_v41 = vpop.eup %1880  ;;  %1900 = vpow2.f32 %v874_v61 }
 0x2cb   :  { %907 = vperm.xlu0 %1820, %v2351_v41   ;;  %v2356_v46 = vpop.eup %1882  ;;  %1902 = vpow2.f32 %v878_v33 }
 0x2cc   :  { %v2360_v48 = vpop.eup %1884  ;;  %1904 = vpow2.f32 %v880_v40 }
 0x2cd   :  { %v2362_v50 = vpop.eup %1886  ;;  %1906 = vpow2.f32 %v882_v9 }
 0x2ce   :  { %934 = vperm.xlu1 %1821, %v2362_v50   ;;  %v2367_v55 = vpop.eup %1888  ;;  %1908 = vpow2.f32 %v884_v15 }
 0x2cf   :  { %910 = vperm.xlu0 %1820, %v2356_v46   ;;  %v2372_v59 = vpop.eup %1890  ;;  %1910 = vpow2.f32 %v886_v1 }
 0x2d0   :  { %v2374_v60 = vpop.eup %1892 }
 0x2d1   :  { %v2379_v62 = vpop.eup %1894 }
 0x2d2   :  { %952 = vperm.xlu1 %1821, %v2372_v59   ;;  %v2384_v0 = vpop.eup %1896 }
 0x2d3   :  { %913 = vperm.xlu0 %1820, %v2360_v48   ;;  %v2388_v5 = vpop.eup %1898 }
 0x2d4   :  { %v2392_v11 = vpop.eup %1900 }
 0x2d5   :  { %v2397_v47 = vpop.eup %1902 }
 0x2d6   :  { %v2400_v17 = vpop.eup %1904 }
 0x2d7   :  { %916 = vperm.xlu0 %1820, %v2367_v55   ;;  %v2403_v49 = vpop.eup %1906 }
 0x2d8   :  { %v2406_v12 = vpop.eup %1908 }
 0x2d9   :  { %v2409_v52 = vpop.eup %1910 }
 0x2db   :  { %919 = vperm.xlu0 %1820, %v2374_v60  }
 0x2df   :  { %922 = vperm.xlu0 %1820, %v2379_v62  }
 0x2e3   :  { %925 = vperm.xlu0 %1820, %v2384_v0  }
 0x2e7   :  { %928 = vperm.xlu0 %1820, %v2388_v5  }
 0x2eb   :  { %931 = vperm.xlu0 %1820, %v2392_v11  }
 0x2ef   :  { %937 = vperm.xlu0 %1820, %v2397_v47  }
 0x2f3   :  { %940 = vperm.xlu0 %1820, %v2400_v17  }
 0x2f7   :  { %943 = vperm.xlu0 %1820, %v2403_v49  }
 0x2fb   :  { %946 = vperm.xlu0 %1820, %v2406_v12  }
 0x2ff   :  { %949 = vperm.xlu0 %1820, %v2409_v52  }
 0x34a   :  { %v908_v6 = vpop.permute.xlu0 %907 }
 0x34b   :  { %v957_v35 = vrot.slane %v908_v6, %v2299_v3 }
 0x34d   :  { %v935_v26 = vpop.permute.xlu1 %934 }
 0x34e   :  { %v911_v19 = vpop.permute.xlu0 %910  ;;  %v997_v30 = vrot.slane %v935_v26, %v2302_v4 }
 0x34f   :  { %v961_v24 = vrot.slane %v911_v19, %v2302_v4 }
 0x351   :  { %v962_v63 = vsel %vm717_vm2, %v961_v24, %v957_v35  ;;  %v953_v8 = vpop.permute.xlu1 %952 }
 0x352   :  { %v914_v22 = vpop.permute.xlu0 %913 }
 0x353   :  { %v966_v45 = vrot.slane %v914_v22, %v2299_v3 }
 0x356   :  { %v917_v25 = vpop.permute.xlu0 %916 }
 0x357   :  { %v970_v39 = vrot.slane %v917_v25, %v2302_v4 }
 0x359   :  { %v971_v37 = vsel %vm717_vm2, %v970_v39, %v966_v45 }
 0x35a   :  { %v920_v28 = vpop.permute.xlu0 %919  ;;  %v1026_v9 = vsel %vm782_vm3, %v971_v37, %v962_v63  ;;  %v1936_v63 = vld [vmem:[%s2687_s2] sm:$0xff]  }
 0x35b   :  { %v975_v54 = vrot.slane %v920_v28, %v2299_v3  ;;  %v1024_v28 = vrot.slane %v953_v8, %v2302_v4  ;;  %v1937_v8 = vld [vmem:[%s2687_s2 + $0x8] sm:$0xff]  }
 0x35e   :  { %v923_v31 = vpop.permute.xlu0 %922 }
 0x35f   :  { %v979_v42 = vrot.slane %v923_v31, %v2302_v4 }
 0x361   :  { %v980_v61 = vsel %vm717_vm2, %v979_v42, %v975_v54 }
 0x362   :  { %v926_v34 = vpop.permute.xlu0 %925  ;;  %v1027_v1 = vsel %vm784_vm4, %v980_v61, %v1026_v9  ;;  %v1250_v9 = vunpack.c.h.bf16 %v1937_v8 }
 0x363   :  { %v984_v56 = vrot.slane %v926_v34, %v2299_v3 }
 0x366   :  { %v929_v18 = vpop.permute.xlu0 %928 }
 0x367   :  { %v988_v32 = vrot.slane %v929_v18, %v2302_v4 }
 0x369   :  { %v989_v33 = vsel %vm717_vm2, %v988_v32, %v984_v56 }
 0x36a   :  { %v932_v36 = vpop.permute.xlu0 %931  ;;  %v1028_v19 = vsel %vm786_vm5, %v989_v33, %v1027_v1  ;;  %v1248_v33 = vunpack.c.h.bf16 %v1936_v63 }
 0x36b   :  { %v993_v53 = vrot.slane %v932_v36, %v2299_v3 }
 0x36d   :  { %v998_v38 = vsel %vm717_vm2, %v997_v30, %v993_v53 }
 0x36e   :  { %v938_v51 = vpop.permute.xlu0 %937  ;;  %v1029_v31 = vsel %vm788_vm6, %v998_v38, %v1028_v19 }
 0x36f   :  { %v1002_v7 = vrot.slane %v938_v51, %v2299_v3 }
 0x372   :  { %v941_v20 = vpop.permute.xlu0 %940 }
 0x373   :  { %v1006_v57 = vrot.slane %v941_v20, %v2302_v4 }
 0x375   :  { %v1007_v6 = vsel %vm717_vm2, %v1006_v57, %v1002_v7 }
 0x376   :  { %v944_v43 = vpop.permute.xlu0 %943  ;;  %v1030_v18 = vsel %vm790_vm7, %v1007_v6, %v1029_v31 }
 0x377   :  { %v1011_v15 = vrot.slane %v944_v43, %v2299_v3 }
 0x37a   :  { %v947_v44 = vpop.permute.xlu0 %946 }
 0x37b   :  { %v1015_v40 = vrot.slane %v947_v44, %v2302_v4 }
 0x37d   :  { %v1016_v22 = vsel %vm717_vm2, %v1015_v40, %v1011_v15  ;;  %v1247_v40 = vunpack.c.l.bf16 %v1936_v63  ;;  %v1249_v15 = vunpack.c.l.bf16 %v1937_v8 }
 0x37e   :  { %v950_v25 = vpop.permute.xlu0 %949  ;;  %v1031_v51 = vsel %vm792_vm8, %v1016_v22, %v1030_v18  ;;  %v1938_v22 = vld [vmem:[%s2687_s2 + $0x10] sm:$0xff]  }
 0x37f   :  { %v1020_v34 = vrot.slane %v950_v25, %v2299_v3  ;;  %v1252_v25 = vunpack.c.h.bf16 %v1938_v22 }
 0x381   :  { %v1025_v36 = vsel %vm717_vm2, %v1024_v28, %v1020_v34  ;;  %v1251_v34 = vunpack.c.l.bf16 %v1938_v22 }
 0x382   :  { %v1032_v20 = vsel %vm794_vm9, %v1025_v36, %v1031_v51 }
 0x383   :  { %v1034_v39 = vsel %vm797_vm10, %v1032_v20, 0.0  ;;  %v1939_v20 = vld [vmem:[%s2687_s2 + $0x18] sm:$0xff]  }
 0x384   :  { %1035 = vadd.xlane.f32.xlu0 %v1034_v39  ;;  %v1253_v39 = vunpack.c.l.bf16 %v1939_v20 }
 0x411   :  { %v1036_v26 = vpop.xlane.xlu0 %1035 }
 0x412   :  { %v1057_v42 = vrot.slane %v1036_v26, %v2149_v23  ;;  %v1041_v43 = vrot.slane %v1036_v26, %v2116_v13  ;;  %v1069_v24 = vrot.slane %v1036_v26, %v2245_v58  ;;  %v1045_v45 = vrot.slane %v1036_v26, %v2120_v14 }
 0x413   :  { %v1049_v35 = vrot.slane %v1036_v26, %v2127_v16  ;;  %v1053_v14 = vrot.slane %v1036_v26, %v2144_v21 }
 0x414   :  { %1912 = vrcp.f32 %v1057_v42 }
 0x415   :  { %1914 = vrcp.f32 %v1041_v43 }
 0x416   :  { %1916 = vrcp.f32 %v1069_v24  ;;  %v1940_v24 = vld [vmem:[%s2687_s2 + $0x20] sm:$0xff]  }
 0x417   :  { %1918 = vrcp.f32 %v1045_v45  ;;  %v1255_v45 = vunpack.c.l.bf16 %v1940_v24 }
 0x418   :  { %1920 = vrcp.f32 %v1049_v35 }
 0x419   :  { %1922 = vrcp.f32 %v1053_v14 }
 0x41e   :  { %v1913_v32 = vpop.eup %1912 }
 0x41f   :  { %v1915_v54 = vpop.eup %1914  ;;  %v1091_v53 = vmul.f32 %v1913_v32, %v2392_v11 }
 0x420   :  { %v1917_v37 = vpop.eup %1916  ;;  %v1079_v56 = vmul.f32 %v1915_v54, %v2351_v41  ;;  %v1080_v23 = vmul.f32 %v1915_v54, %v2356_v46 }
 0x421   :  { %1143 = vperm.xlu0 %1820, %v1091_v53   ;;  %v1101_v13 = vmul.f32 %v1917_v37, %v2372_v59  ;;  %v1919_v58 = vpop.eup %1918  ;;  %v1061_v59 = vrot.slane %v1036_v26, %v2162_v27 }
 0x422   :  { %1119 = vperm.xlu1 %1821, %v1079_v56   ;;  %v1082_v57 = vmul.f32 %v1919_v58, %v2360_v48  ;;  %v1083_v16 = vmul.f32 %v1919_v58, %v2367_v55  ;;  %v1921_v11 = vpop.eup %1920  ;;  %v1065_v48 = vrot.slane %v1036_v26, %v2167_v29  ;;  %v1092_v55 = vmul.f32 %v1913_v32, %v2362_v50  ;;  %v1834_v50 = vld [vmem:[%s2694_s9] sm:$0xff]  }
 0x423   :  { %v1085_v41 = vmul.f32 %v1921_v11, %v2374_v60  ;;  %v1086_v46 = vmul.f32 %v1921_v11, %v2379_v62  ;;  %v1923_v30 = vpop.eup %1922  ;;  %1924 = vrcp.f32 %v1061_v59  ;;  %1788 = vmatpush3.bf16.msra.mxu0 %v1834_v50  ;;  %v1254_v26 = vunpack.c.h.bf16 %v1939_v20 }
 0x424   :  { %v1088_v21 = vmul.f32 %v1923_v30, %v2384_v0  ;;  %v1089_v61 = vmul.f32 %v1923_v30, %v2388_v5  ;;  %1926 = vrcp.f32 %v1065_v48  ;;  %v1100_v5 = vmul.f32 %v1917_v37, %v2409_v52  ;;  %1789 = vmatprep.subr.bf16.mxu0 %v1992_v2 }
 0x425   :  { %1164 = vperm.xlu0 %1820, %v1101_v13  }
 0x426   :  { %1122 = vperm.xlu1 %1821, %v1080_v23   ;;  %v1256_v23 = vunpack.c.h.bf16 %v1940_v24 }
 0x42a   :  { %1125 = vperm.xlu1 %1821, %v1082_v57  }
 0x42d   :  { %v1925_v60 = vpop.eup %1924 }
 0x42e   :  { %1128 = vperm.xlu1 %1821, %v1083_v16   ;;  %v1094_v27 = vmul.f32 %v1925_v60, %v2397_v47  ;;  %v1095_v62 = vmul.f32 %v1925_v60, %v2400_v17  ;;  %v1927_v44 = vpop.eup %1926  ;;  %v1835_v47 = vld [vmem:[%s2694_s9 + $0x8] sm:$0xff]   ;;  %s1998_s9 = smov [#allocation4]  }
 0x42f   :  { %v1097_v0 = vmul.f32 %v1927_v44, %v2403_v49  ;;  %v1098_v29 = vmul.f32 %v1927_v44, %v2406_v12  ;;  %1790 = vmatpush3.bf16.msra.mxu0 %v1835_v47  ;;  %s1669_s1 = sshll.u32 %s1998_s9, 4  ;;  %s1670_s1 = int_to_ptr.vmem [resolvable:$true] %s1669_s1 }
 0x430   :  { %1795 = vmatprep.subr.bf16.mxu0 %v1992_v2  ;;  %s1944_s27 = scalar_lea.vmem %s1670_s1, 128  ;;  %p1949_p1 = scmp.lt.s32.totalorder %s1670_s1, %s1670_s1 }
 0x431   :  { %p1945_p0 = scmp.ne.s32.totalorder %s1670_s1, %s1944_s27  ;;  %p1950_p2 = scmp.lt.s32.totalorder %s1944_s27, %s1944_s27 }
 0x432   :  { %1131 = vperm.xlu1 %1821, %v1085_v41  }
 0x433   :  { %p1951_p3 = por %p1950_p2, %p1949_p1 }
 0x435   :  { %p1952_p4 = pnand %p1951_p3, %p1945_p0 }
 0x436   :  { %1134 = vperm.xlu1 %1821, %v1086_v46  }
 0x43a   :  { %1137 = vperm.xlu1 %1821, %v1088_v21  }
 0x43e   :  { %1140 = vperm.xlu1 %1821, %v1089_v61  }
 0x442   :  { %1146 = vperm.xlu1 %1821, %v1092_v55  }
 0x446   :  { %1149 = vperm.xlu1 %1821, %v1094_v27   ;;  %v1941_v27 = vld [vmem:[%s2687_s2 + $0x28] sm:$0xff]  }
 0x447   :  { %v1258_v63 = vunpack.c.h.bf16 %v1941_v27 }
 0x44a   :  { %1152 = vperm.xlu1 %1821, %v1095_v62   ;;  %v1257_v62 = vunpack.c.l.bf16 %v1941_v27 }
 0x44e   :  { %1155 = vperm.xlu1 %1821, %v1097_v0  }
 0x452   :  { %1158 = vperm.xlu1 %1821, %v1098_v29  }
 0x456   :  { %1161 = vperm.xlu1 %1821, %v1100_v5   ;;  %v2539_v5 = vld [vmem:[%s2687_s2 + $0x38] sm:$0xff]  }
 0x457   :  { %v1262_v50 = vunpack.c.h.bf16 %v2539_v5 }
 0x4a0   :  { %v2514_v54 = vpop.permute.xlu0 %1143 }
 0x4a1   :  { %v2476_v17 = vpop.permute.xlu1 %1119  ;;  %v1287_v57 = vmul.f32 %v1255_v45, %v2514_v54 }
 0x4a2   :  { %v1279_v6 = vmul.f32 %v1247_v40, %v2476_v17 }
 0x4a3   :  { %v1331_v55 = vsel %vm84_vm1, %v1287_v57, 0.0 }
 0x4a4   :  { %v1295_v36 = vsel %vm84_vm1, %v1279_v6, 0.0  ;;  %v2545_v8 = vpop.permute.xlu0 %1164 }
 0x4a5   :  { %v2478_v49 = vpop.permute.xlu1 %1122  ;;  %v1294_v20 = vmul.f32 %v1262_v50, %v2545_v8 }
 0x4a6   :  { %v1280_v38 = vmul.f32 %v1248_v33, %v2478_v49  ;;  %v1943_v33 = vld [vmem:[%s2687_s2 + $0x30] sm:$0xff]  }
 0x4a7   :  { %v1259_v40 = vunpack.c.l.bf16 %v1943_v33  ;;  %v1260_v6 = vunpack.c.h.bf16 %v1943_v33 }
 0x4a8   :  { %v1296_v28 = vsel %vm84_vm1, %v1280_v38, 0.0 }
 0x4a9   :  { %v2480_v12 = vpop.permute.xlu1 %1125  ;;  %v1297_v42 = vadd.f32 %v1296_v28, %v1295_v36  ;;  %v1261_v28 = vunpack.c.l.bf16 %v2539_v5 }
 0x4aa   :  { %v1281_v31 = vmul.f32 %v1249_v15, %v2480_v12  ;;  %v1178_v36 = vrot.slane %v2480_v12, %v2299_v3 }
 0x4ab   :  { %v1298_v58 = vrot.slane %v1297_v42, 4 }
 0x4ac   :  { %v1304_v32 = vsel %vm84_vm1, %v1281_v31, 0.0  ;;  %v1169_v31 = vrot.slane %v2476_v17, %v2299_v3 }
 0x4ad   :  { %v2482_v52 = vpop.permute.xlu1 %1128  ;;  %v1299_v48 = vadd.f32 %v1298_v58, %v1297_v42 }
 0x4ae   :  { %v1282_v19 = vmul.f32 %v1250_v9, %v2482_v52  ;;  %v1182_v38 = vrot.slane %v2482_v52, %v2302_v4 }
 0x4af   :  { %v1300_v9 = vrot.slane %v1299_v48, 2 }
 0x4b0   :  { %v1305_v51 = vsel %vm84_vm1, %v1282_v19, 0.0  ;;  %v1205_v19 = vrot.slane %v2514_v54, %v2299_v3  ;;  %v1183_v17 = vsel %vm717_vm2, %v1182_v38, %v1178_v36 }
 0x4b1   :  { %v2487_v7 = vpop.permute.xlu1 %1131  ;;  %v1306_v53 = vadd.f32 %v1305_v51, %v1304_v32  ;;  %v2564_v24 = vadd.f32 %v1300_v9, %v1299_v48 }
 0x4b2   :  { %v1283_v35 = vmul.f32 %v1251_v34, %v2487_v7  ;;  %v1173_v34 = vrot.slane %v2478_v49, %v2302_v4  ;;  %v1187_v12 = vrot.slane %v2487_v7, %v2299_v3 }
 0x4b3   :  { %v1307_v11 = vrot.slane %v1306_v53, 4 }
 0x4b4   :  { %v1313_v41 = vsel %vm84_vm1, %v1283_v35, 0.0 }
 0x4b5   :  { %v2493_v1 = vpop.permute.xlu1 %1134  ;;  %v1308_v44 = vadd.f32 %v1307_v11, %v1306_v53 }
 0x4b6   :  { %v1284_v43 = vmul.f32 %v1252_v25, %v2493_v1 }
 0x4b7   :  { %v1309_v52 = vrot.slane %v1308_v44, 2 }
 0x4b8   :  { %v1314_v14 = vsel %vm84_vm1, %v1284_v43, 0.0  ;;  %v1236_v43 = vrot.slane %v2545_v8, %v2302_v4 }
 0x4b9   :  { %v2502_v18 = vpop.permute.xlu1 %1137  ;;  %v1315_v46 = vadd.f32 %v1314_v14, %v1313_v41  ;;  %v1310_v53 = vadd.f32 %v1309_v52, %v1308_v44 }
 0x4ba   :  { %v1285_v56 = vmul.f32 %v1253_v39, %v2502_v18  ;;  %v1191_v39 = vrot.slane %v2493_v1, %v2302_v4  ;;  %v1174_v1 = vsel %vm717_vm2, %v1173_v34, %v1169_v31  ;;  %v1196_v57 = vrot.slane %v2502_v18, %v2299_v3 }
 0x4bb   :  { %v1316_v47 = vrot.slane %v1315_v46, 4  ;;  %v1238_v58 = vsel %vm782_vm3, %v1183_v17, %v1174_v1  ;;  %v1311_v48 = vrot.slane %v1310_v53, 1 }
 0x4bc   :  { %v1322_v30 = vsel %vm84_vm1, %v1285_v56, 0.0  ;;  %v1192_v14 = vsel %vm717_vm2, %v1191_v39, %v1187_v12 }
 0x4bd   :  { %v2517_v37 = vpop.permute.xlu1 %1140  ;;  %v1312_v31 = vadd.f32 %v1311_v48, %v1310_v53 }
 0x4be   :  { %v1286_v13 = vmul.f32 %v1254_v26, %v2517_v37  ;;  %v1317_v26 = vadd.f32 %v1316_v47, %v1315_v46  ;;  %v1200_v35 = vrot.slane %v2517_v37, %v2302_v4  ;;  %v1302_v46 = vrot.slane %v2564_v24, 1 }
 0x4bf   :  { %v1368_v53 = vpack.c.bf16 %v1312_v31, %v1312_v31 }
 0x4c0   :  { %v1323_v16 = vsel %vm84_vm1, %v1286_v13, 0.0  ;;  %v1318_v7 = vrot.slane %v1317_v26, 2 }
 0x4c1   :  { %v2525_v59 = vpop.permute.xlu1 %1146  ;;  %v1324_v61 = vadd.f32 %v1323_v16, %v1322_v30 }
 0x4c2   :  { %v1288_v21 = vmul.f32 %v1256_v23, %v2525_v59  ;;  %v1359_v23 = vsel %vm84_vm1, %v1294_v20, 0.0  ;;  %v1209_v11 = vrot.slane %v2525_v59, %v2302_v4 }
 0x4c3   :  { %v1325_v15 = vrot.slane %v1324_v61, 4 }
 0x4c4   :  { %v1332_v60 = vsel %vm84_vm1, %v1288_v21, 0.0  ;;  %v1210_v5 = vsel %vm717_vm2, %v1209_v11, %v1205_v19 }
 0x4c5   :  { %v1333_v0 = vadd.f32 %v1332_v60, %v1331_v55  ;;  %v2534_v29 = vpop.permute.xlu1 %1149  ;;  %v1326_v49 = vadd.f32 %v1325_v15, %v1324_v61  ;;  %v1239_v61 = vsel %vm784_vm4, %v1192_v14, %v1238_v58  ;;  %v1201_v55 = vsel %vm717_vm2, %v1200_v35, %v1196_v57 }
 0x4c6   :  { %v1289_v25 = vmul.f32 %v1257_v62, %v2534_v29  ;;  %v1319_v62 = vadd.f32 %v1318_v7, %v1317_v26  ;;  %v1214_v18 = vrot.slane %v2534_v29, %v2299_v3  ;;  %v1240_v9 = vsel %vm786_vm5, %v1201_v55, %v1239_v61 }
 0x4c7   :  { %v1334_v22 = vrot.slane %v1333_v0, 4  ;;  %v1327_v16 = vrot.slane %v1326_v49, 2  ;;  %v1241_v19 = vsel %vm788_vm6, %v1210_v5, %v1240_v9  ;;  %v47_v9 = vld [vmem:[%s2685_s0] sm:$0xff] }
 0x4c8   :  { %v1340_v32 = vsel %vm84_vm1, %v1289_v25, 0.0 }
 0x4c9   :  { %v1153_v51 = vpop.permute.xlu1 %1152  ;;  %v1335_v45 = vadd.f32 %v1334_v22, %v1333_v0  ;;  %v1328_v0 = vadd.f32 %v1327_v16, %v1326_v49  ;;  %v1392_v16 = vunpack.c.l.b16 %v1368_v53 }
 0x4ca   :  { %v1290_v42 = vmul.f32 %v1258_v63, %v1153_v51  ;;  %v1218_v30 = vrot.slane %v1153_v51, %v2302_v4 }
 0x4cb   :  { %v1336_v37 = vrot.slane %v1335_v45, 2  ;;  %v1329_v34 = vrot.slane %v1328_v0, 1 }
 0x4cc   :  { %v1341_v54 = vsel %vm84_vm1, %v1290_v42, 0.0  ;;  %v1219_v33 = vsel %vm717_vm2, %v1218_v30, %v1214_v18 }
 0x4cd   :  { %v1342_v56 = vadd.f32 %v1341_v54, %v1340_v32  ;;  %v1156_v13 = vpop.permute.xlu1 %1155  ;;  %v1337_v63 = vadd.f32 %v1336_v37, %v1335_v45  ;;  %v1242_v52 = vsel %vm790_vm7, %v1219_v33, %v1241_v19  ;;  %v1836_v33 = vld [vmem:[%s2693_s8] sm:$0xff]  }
 0x4ce   :  { %v1291_v21 = vmul.f32 %v1259_v40, %v1156_v13  ;;  %v1223_v47 = vrot.slane %v1156_v13, %v2299_v3 }
 0x4cf   :  { %v1343_v41 = vrot.slane %v1342_v56, 4  ;;  %v1338_v51 = vrot.slane %v1337_v63, 1 }
 0x4d0   :  { %v1349_v40 = vsel %vm84_vm1, %v1291_v21, 0.0 }
 0x4d1   :  { %v1344_v60 = vadd.f32 %v1343_v41, %v1342_v56  ;;  %v1159_v27 = vpop.permute.xlu1 %1158  ;;  %v1339_v1 = vadd.f32 %v1338_v51, %v1337_v63 }
 0x4d2   :  { %v1227_v59 = vrot.slane %v1159_v27, %v2302_v4  ;;  %v1292_v44 = vmul.f32 %v1260_v6, %v1159_v27  ;;  %v1320_v6 = vrot.slane %v1319_v62, 1 }
 0x4d3   :  { %v1345_v50 = vrot.slane %v1344_v60, 2  ;;  %v1371_v57 = vpack.c.bf16 %v1339_v1, %v1339_v1 }
 0x4d4   :  { %v1350_v8 = vsel %vm84_vm1, %v1292_v44, 0.0  ;;  %v1228_v29 = vsel %vm717_vm2, %v1227_v59, %v1223_v47  ;;  %v1321_v45 = vadd.f32 %v1320_v6, %v1319_v62 }
 0x4d5   :  { %v1346_v38 = vadd.f32 %v1345_v50, %v1344_v60  ;;  %v1351_v4 = vadd.f32 %v1350_v8, %v1349_v40  ;;  %v1162_v15 = vpop.permute.xlu1 %1161  ;;  %v1243_v26 = vsel %vm792_vm8, %v1228_v29, %v1242_v52  ;;  %v1395_v61 = vunpack.c.l.b16 %v1371_v57  ;;  %v1837_v8 = vld [vmem:[%s2693_s8 + $0x8] sm:$0xff]   ;;  %v1838_v29 = vld [vmem:[%s2695_s10] sm:$0xff]  }
 0x4d6   :  { %v1232_v22 = vrot.slane %v1162_v15, %v2299_v3  ;;  %v1293_v25 = vmul.f32 %v1261_v28, %v1162_v15  ;;  %v1303_v3 = vadd.f32 %v1302_v46, %v2564_v24  ;;  %v1330_v28 = vadd.f32 %v1329_v34, %v1328_v0 }
 0x4d7   :  { %v1352_v36 = vrot.slane %v1351_v4, 4  ;;  %v1347_v42 = vrot.slane %v1346_v38, 1  ;;  %v1369_v13 = vpack.c.bf16 %v1321_v45, %v1321_v45 }
 0x4d8   :  { %v1358_v20 = vsel %vm84_vm1, %v1293_v25, 0.0  ;;  %v1237_v39 = vsel %vm717_vm2, %v1236_v43, %v1232_v22  ;;  %v1367_v58 = vpack.c.bf16 %v1303_v3, %v1303_v3  ;;  %v1370_v14 = vpack.c.bf16 %v1330_v28, %v1330_v28 }
 0x4d9   :  { %v1353_v17 = vadd.f32 %v1352_v36, %v1351_v4  ;;  %v1360_v49 = vadd.f32 %v1359_v23, %v1358_v20  ;;  %v1244_v12 = vsel %vm794_vm9, %v1237_v39, %v1243_v26  ;;  %v1348_v35 = vadd.f32 %v1347_v42, %v1346_v38  ;;  %v1839_v4 = vld [vmem:[%s2695_s10 + $0x8] sm:$0xff]   ;;  %v1715_v20 = vld [vmem:[%s2696_s11] ss:$0 sm:$0xff]  ;;  %s1997_s11 = smov 96  }
 0x4da   :  { %1246 = vst.msk [vmem:[#allocation4] sm:$0xff] %vm797_vm10, %v1244_v12  ;;  %v1393_v30 = vunpack.c.l.b16 %v1369_v13  ;;  %v1391_v24 = vunpack.c.l.b16 %v1367_v58  ;;  %v1394_v46 = vunpack.c.l.b16 %v1370_v14  ;;  %v2627_v38 = vpack.c.bf16 %v47_v9, %v47_v9 }
 0x4db   :  { %v1354_v32 = vrot.slane %v1353_v17, 2  ;;  %v1361_v54 = vrot.slane %v1360_v49, 4  ;;  %v1372_v11 = vpack.c.bf16 %v1348_v35, %v1348_v35 }
 0x4dc   :  { %v1399_v55 = vsel %vm782_vm3, %v1392_v16, %v1391_v24 }
 0x4dd   :  { %v1355_v56 = vadd.f32 %v1354_v32, %v1353_v17  ;;  %v1362_v43 = vadd.f32 %v1361_v54, %v1360_v49  ;;  %v1396_v60 = vunpack.c.l.b16 %v1372_v11  ;;  %v1400_v62 = vsel %vm784_vm4, %v1393_v30, %v1399_v55 }
 0x4de   :  { %v1401_v59 = vsel %vm786_vm5, %v1394_v46, %v1400_v62 }
 0x4df   :  { %v1356_v7 = vrot.slane %v1355_v56, 1  ;;  %v1363_v23 = vrot.slane %v1362_v43, 2  ;;  %v1402_v0 = vsel %vm788_vm6, %v1395_v61, %v1401_v59 }
 0x4e0   :  { %v1403_v5 = vsel %vm790_vm7, %v1396_v60, %v1402_v0 }
 0x4e1   :  { %v1357_v41 = vadd.f32 %v1356_v7, %v1355_v56  ;;  %v1364_v37 = vadd.f32 %v1363_v23, %v1362_v43 }
 0x4e3   :  { %v1373_v21 = vpack.c.bf16 %v1357_v41, %v1357_v41  ;;  %v1365_v48 = vrot.slane %v1364_v37, 1 }
 0x4e5   :  { %v1366_v27 = vadd.f32 %v1365_v48, %v1364_v37  ;;  %v1397_v18 = vunpack.c.l.b16 %v1373_v21 }
 0x4e7   :  { %v1374_v44 = vpack.c.bf16 %v1366_v27, %v1366_v27  ;;  %v1404_v47 = vsel %vm792_vm8, %v1397_v18, %v1403_v5 }
 0x4e9   :  { %v1398_v50 = vunpack.c.l.b16 %v1374_v44 }
 0x4eb   :  { %v1405_v63 = vsel %vm794_vm9, %v1398_v50, %v1404_v47 }
 0x4ec   :  { %v2614_v40 = vpack.c.b16 %v1405_v63, %v1405_v63 }
 0x4ee   :  { %1792 = vmatmul.mubr.msk.bf16.vlgmr.msra.gmra.mrb[4].mxu0 %vm84_vm1, %v2614_v40 }
 0x4ef   :  { %1796 = vmatpush3.bf16.msra.mxu0 %v1836_v33  ;;  %1799 = vmatprep.mubr.msk.bf16.mxu0 %vm1993_vm0, %v1992_v2 }
 0x4f0   :  { %1797 = vmatprep.subr.bf16.mxu0 %v1992_v2 }
 0x4f3   :  { %1798 = vmatpush3.bf16.msra.mxu0 %v1837_v8 }
 0x4f4   :  { %1803 = vmatprep.subr.bf16.mxu0 %v1992_v2 }
 0x4f6   :  { %1800 = vmatmul.mubr.msk.bf16.vlgmr.msra.gmra.mrb[8].mxu0 %vm84_vm1, %v2627_v38 }
 0x4f7   :  { %1804 = vmatpush3.bf16.msra.mxu0 %v1838_v29  ;;  %1807 = vmatprep.mubr.msk.bf16.mxu0 %vm1993_vm0, %v1992_v2 }
 0x4f8   :  { %1805 = vmatprep.subr.bf16.mxu0 %v1992_v2 }
 0x4fb   :  { %1806 = vmatpush3.bf16.msra.mxu0 %v1839_v4 }
 0x4fe   :  { %1808 = vmatmul.mubr.msk.bf16.vlgmr.msra.gmra.mrb[12].mxu0 %vm84_vm1, %v2104_v10 }
 0x5c1   :  { %v1456_v15 = vpop.f32.mrb[4].mxu0 }
 0x5c2   :  { %v1793_v6 = vpop.f32.mrb[5].mxu0 }
 0x5c3   :  { %v1459_v19 = vpop.f32.mrb[6].mxu0 }
 0x5c4   :  { %v1794_v22 = vpop.f32.mrb[7].mxu0 }
 0x5c9   :  { %v1511_v25 = vpop.f32.mrb[8].mxu0 }
 0x5ca   :  { %v1512_v31 = vadd.f32 %v1511_v25, %v1456_v15  ;;  %v1801_v34 = vpop.f32.mrb[9].mxu0 }
 0x5cb   :  { %v1514_v36 = vpop.f32.mrb[10].mxu0 }
 0x5cc   :  { %v1802_v52 = vpop.f32.mrb[11].mxu0 }
 0x5d1   :  { %v1567_v51 = vpop.f32.mrb[12].mxu0 }
 0x5d2   :  { %v1573_v39 = vadd.f32 %v1567_v51, %v1512_v31  ;;  %v1809_v2 = vpop.f32.mrb[13].mxu0 }
 0x5d3   :  { %v1570_v26 = vpop.f32.mrb[14].mxu0 }
 0x5d4   :  { %v1581_v42 = vadd.f32 %v1715_v20, %v1573_v39  ;;  %v1810_v17 = vpop.f32.mrb[15].mxu0 }
 0x5d6   :  { %1928 = vtanh.f32 %v1581_v42  ;;  %v1716_v49 = vmul.f32 -1.442695, %v1581_v42 }
 0x5d8   :  { %1930 = vpow2.f32 %v1716_v49 }
 0x5e0   :  { %v1929_v10 = vpop.eup %1928 }
 0x5e1   :  { %1590 = vrot.lane.b32.xlu1 %v1929_v10, %s1996_s26 }
 0x5e2   :  { %v1931_v12 = vpop.eup %1930 }
 0x5e3   :  { %v1585_v45 = vadd.f32 1.0, %v1931_v12 }
 0x5e5   :  { %1932 = vrcp.f32 %v1585_v45 }
 0x5ef   :  { %v1933_v3 = vpop.eup %1932 }
 0x653   :  { %v1591_v28 = vpop.permute.xlu1 %1590 }
 0x654   :  { %v1593_v32 = vmul.f32 %v1933_v3, %v1591_v28 }
 0x656   :  { %1934 = vtanh.f32 %v1593_v32 }
 0x660   :  { %v1935_v54 = vpop.eup %1934 }
 0x661   :  { %1596 = vrot.lane.b32.xlu0 %v1935_v54, %s1997_s11 }
 0x6d3   :  { %v1597_v1 = vpop.permute.xlu0 %1596 }
 0x6d4   :  { %1955 = shalt.err (!%p1952_p4)
}
 0x6d5   :  { %s1956_s29 = scalar_lea.hbm %s2699_s14, 128 }
 0x6d6   :  { %p1957_p5 = scmp.ne.s32.totalorder %s2699_s14, %s1956_s29  ;;  %p1960_p6 = scmp.lt.u32.totalorder %s1956_s29, %s2699_s14 }
 0x6d8   :  { %p1962_p7 = pnand %p1960_p6, %p1957_p5 }
 0x6da   :  { %1965 = shalt.err (!%p1962_p7)
}
 0x6db   :  { %1672 = dma.vmem_to_hbm [thread:$0]  %s1670_s1, 128, %s2699_s14, [#allocation5]   ;;  %v1599_v53 = vmul.f32 %v1933_v3, %v1597_v1  ;;  %vm1612_vm11 = vcmask 257024  }
 0x6dc   :  { %s1999_s20 = smov 32   ;;  %s2000_s21 = smov [#allocation2]  }
 0x6dd   :  { %v1727_v35 = vpack.c.bf16 %v1599_v53, %v1599_v53  ;;  %1601 = vrot.lane.b32.xlu0 %v1599_v53, %s1999_s20  ;;  %s1659_s2 = sshll.u32 %s2000_s21, 4  ;;  %s1660_s2 = int_to_ptr.vmem [resolvable:$true] %s1659_s2 }
 0x6de   :  { %s1966_s22 = scalar_lea.vmem %s1660_s2, 128  ;;  %p1971_p9 = scmp.lt.s32.totalorder %s1660_s2, %s1660_s2 }
 0x6df   :  { %1609 = vrot.lane.b32.xlu1 %v1727_v35, %s1999_s20  ;;  %p1967_p8 = scmp.ne.s32.totalorder %s1660_s2, %s1966_s22  ;;  %p1972_p10 = scmp.lt.s32.totalorder %s1966_s22, %s1966_s22 }
 0x6e1   :  { %1646 = vrot.lane.b32.xlu0 %v2627_v38, %s1996_s26  ;;  %p1973_p11 = por %p1972_p10, %p1971_p9 }
 0x6e3   :  { %1638 = vrot.lane.b32.xlu1 %v2614_v40, %s1999_s20  ;;  %p1974_p12 = pnand %p1973_p11, %p1967_p8 }
 0x74f   :  { %v1602_v56 = vpop.permute.xlu0 %1601 }
 0x750   :  { %1604 = vst.msk [vmem:[#allocation2] sm:$0xff] %vm84_vm1, %v1602_v56 }
 0x751   :  { %v1610_v43 = vpop.permute.xlu1 %1609 }
 0x752   :  { %1977 = shalt.err (!%p1974_p12)
}
 0x753   :  { %s1978_s4 = scalar_lea.hbm %s2698_s13, 128 }
 0x754   :  { %p1979_p13 = scmp.ne.s32.totalorder %s2698_s13, %s1978_s4  ;;  %p1982_p0 = scmp.lt.u32.totalorder %s1978_s4, %s2698_s13 }
 0x756   :  { %p1984_p1 = pnand %p1982_p0, %p1979_p13 }
 0x758   :  { %1987 = shalt.err (!%p1984_p1)
}
 0x759   :  { %1662 = dma.vmem_to_hbm [thread:$0]  %s1660_s2, 128, %s2698_s13, [#allocation3]   ;;  %1613 = vst.msk [vmem:[%s2697_s12] sm:$0xf] %vm1612_vm11, %v1610_v43  ;;  %vm1641_vm12 = vcmask 519424   ;;  %vm1649_vm13 = vcmask 781824   ;;  %v1647_v13 = vpop.permute.xlu0 %1646  ;;  %v1639_v58 = vpop.permute.xlu1 %1638 }
 0x75a   :  { %1642 = vst.msk [vmem:[%s2697_s12] sm:$0xf] %vm1641_vm12, %v1639_v58 }
 0x75b   :  { %1650 = vst.msk [vmem:[%s2697_s12] sm:$0xf] %vm1649_vm13, %v1647_v13 }
 0x75c   :  { %1988 = dma.done.wait [#allocation3], 128  }
 0x75d   :  { %1989 = vsyncadd [#allocation3], 4294967168 }
 0x75e   :  { %1990 = dma.done.wait [#allocation5], 128  }
 0x75f   :  { %1991 = vsyncadd [#allocation5], 4294967168 }
 0x760   :  { %1681 = vsyncpa [#allocation3], 1 }
 0x761   :  { %1682 = vsyncpa [#allocation5], 1 }

</bundles_post_ra>
